<compile_context>
chip_gen: v5e
topology: v5e:2x2
jax: 0.10.0
libtpu: 0.0.40
codegen_flags: <defaults>
</compile_context>

<pallas_src>
import functools
import math

import jax
import jax.numpy as jnp
import numpy as np
from jax import lax
from jax.experimental import pallas as pl
from jax.experimental.pallas import tpu as pltpu


# -----------------------------------------------------------------------------
# GELU helper (exact-erf form via an f32-accurate polynomial)
# -----------------------------------------------------------------------------
def _erf(x):
    # Abramowitz & Stegun 7.1.26, max abs error ~1.5e-7.
    # TODO(synk): torch.nn.GELU() uses exact erf; Mosaic has no erf primitive,
    # so an f32-accurate polynomial (exp + arithmetic only) is used instead.
    p = 0.3275911
    a1, a2, a3, a4, a5 = 0.254829592, -0.284496736, 1.421413741, -1.453152027, 1.061405429
    s = jnp.where(x >= 0.0, 1.0, -1.0)
    z = jnp.abs(x)
    t = 1.0 / (1.0 + p * z)
    poly = ((((a5 * t + a4) * t + a3) * t + a2) * t + a1) * t
    return s * (1.0 - poly * jnp.exp(-z * z))


def _gelu(x):
    return 0.5 * x * (1.0 + _erf(x * 0.7071067811865476))


# -----------------------------------------------------------------------------
# Fused Pallas kernel: SPS batch elements per grid step
# -----------------------------------------------------------------------------
def _make_fused_kernel(SPS: int, C: int, H: int, W: int):
    HW = H * W
    # Tap flat-offsets for a 3x3, stride-1, padding-1 convolution, t = (oy+1)*3+(ox+1).
    offsets = [oy * W + ox for oy in (-1, 0, 1) for ox in (-1, 0, 1)]

    def kernel(x_ref, ctx_ref, ctxT_ref, masks_ref, small_ref, wqk_ref, wvo_ref,
               bo_ref, w1_ref, o_ref):
        m = masks_ref[...]                    # (9, HW)  1.0 inside image, 0.0 outside
        small = small_ref[...]                # (C, 16)  packed per-channel params
        wds = small[:, 0:9]                   # depthwise conv taps
        gn_g, gn_b = small[:, 9:10], small[:, 10:11]
        grn_g, grn_b = small[:, 11:12], small[:, 12:13]
        ls_g = small[:, 13:14]
        wqk = wqk_ref[...]                    # (D, Dc)  folded scale * Wq^T @ Wk
        wvo = wvo_ref[...]                    # (Dc, D)  folded Wv^T @ Wo^T
        bo = bo_ref[...]                      # (1, D)
        w1 = w1_ref[...]                      # (C, 9C)  conv_1 im2col weight slab

        def tap(v, t):
            # out[:, i] = v[:, i + offset] inside the image, 0 outside (zero padding).
            s = offsets[t]
            shifted = v if s == 0 else jnp.roll(v, -s, axis=1)
            return shifted * m[t:t + 1]

        for s in range(SPS):                  # static unroll over samples in this step
            x = x_ref[s]                      # (C, HW)
            ctx = ctx_ref[s]                  # (Nc, Dc)
            ctxT = ctxT_ref[s]                # (Dc, Nc)

            # --- conv_ds: depthwise Conv2d 3x3 s1 p1, no bias (9 weighted VPU taps) ---
            h = wds[:, 0:1] * tap(x, 0)
            for t in range(1, 9):
                h = h + wds[:, t:t + 1] * tap(x, t)

            # --- norm_1: GroupNorm(num_groups=1), eps=1e-5, per-channel affine ---
            mean = jnp.mean(h, axis=(0, 1), keepdims=True)
            var = jnp.mean((h - mean) ** 2, axis=(0, 1), keepdims=True)
            h = (h - mean) * lax.rsqrt(var + 1e-5)
            h = h * gn_g + gn_b

            # --- cross_attention (heads=1), projections folded host-side ---
            p = jnp.dot(h, wqk, preferred_element_type=jnp.float32)      # (C, Dc)
            sim = jnp.dot(p, ctxT, preferred_element_type=jnp.float32)   # (C, Nc), scale folded
            sim = sim - jnp.max(sim, axis=-1, keepdims=True)
            e = jnp.exp(sim)
            attn = e * pl.reciprocal(jnp.sum(e, axis=-1, keepdims=True), approx=True)
            v = jnp.dot(ctx, wvo, preferred_element_type=jnp.float32)    # (Nc, D)
            a = jnp.dot(attn, v, preferred_element_type=jnp.float32) + bo  # (C, D)

            # --- act_1: GELU (erf form) ---
            a = _gelu(a)

            # --- conv_1: dense Conv2d 3x3 s1 p1, no bias, as ONE im2col matmul ---
            # im2col operand built as a value (no VMEM scratch round-trip).
            col = jnp.concatenate([tap(a, t) for t in range(9)], axis=0)  # (9C, HW)
            h2 = jnp.dot(w1, col, preferred_element_type=jnp.float32)     # (C, HW)

            # --- grn: global response normalization ---
            gx = jnp.sqrt(jnp.sum(h2 * h2, axis=1, keepdims=True))        # (C, 1)
            nx = gx * pl.reciprocal(jnp.mean(gx, axis=0, keepdims=True) + 1e-6,
                                    approx=True)
            h2 = grn_g * (h2 * nx) + grn_b + h2

            # --- ls: LayerScale; residual add ---
            o_ref[s] = h2 * ls_g + x

    return kernel


# -----------------------------------------------------------------------------
# Wrapper: single pallas_call for the whole block
# -----------------------------------------------------------------------------
@functools.partial(jax.jit, static_argnames=("samples_per_step",))
def forward(x_nchw, context, kp, samples_per_step):
    B, C, H, W = x_nchw.shape
    HW = H * W
    _, Nc, Hc, Wc = context.shape
    Dc = Hc * Wc
    SPS = samples_per_step
    assert B % SPS == 0
    G = B // SPS

    x_flat = x_nchw.reshape(B, C, HW)                 # glue: NCHW -> (B, C, H*W)
    ctx_flat = context.reshape(B, Nc, Dc)             # context.view(B, Cc, Hc*Wc)
    ctx_t = jnp.transpose(ctx_flat, (0, 2, 1))        # (B, Dc, Nc) for the score matmul

    out = pl.pallas_call(
        _make_fused_kernel(SPS, C, H, W),
        out_shape=jax.ShapeDtypeStruct((B, C, HW), jnp.float32),
        grid=(G,),
        in_specs=[
            pl.BlockSpec((SPS, C, HW), lambda b: (b, 0, 0)),    # x
            pl.BlockSpec((SPS, Nc, Dc), lambda b: (b, 0, 0)),   # context (Nc, Dc)
            pl.BlockSpec((SPS, Dc, Nc), lambda b: (b, 0, 0)),   # context^T (Dc, Nc)
            pl.BlockSpec((9, HW), lambda b: (0, 0)),            # 3x3 padding masks
            pl.BlockSpec((C, 16), lambda b: (0, 0)),            # packed per-channel params
            pl.BlockSpec((HW, Dc), lambda b: (0, 0)),           # Wqk = scale * Wq^T @ Wk
            pl.BlockSpec((Dc, HW), lambda b: (0, 0)),           # Wvo = Wv^T @ Wo^T
            pl.BlockSpec((1, HW), lambda b: (0, 0)),            # to_out bias
            pl.BlockSpec((C, 9 * C), lambda b: (0, 0)),         # conv_1 im2col weight slab
        ],
        out_specs=pl.BlockSpec((SPS, C, HW), lambda b: (b, 0, 0)),
        compiler_params=pltpu.CompilerParams(dimension_semantics=("parallel",)),
    )(x_flat, ctx_flat, ctx_t, kp["masks"], kp["small"], kp["wqk"], kp["wvo"],
      kp["bo"], kp["w1"])
    return out.reshape(B, C, H, W)


def _num_tensorcores_per_chip() -> int:
    # v7x exposes 2 TensorCores per chip; v5e/v6e have 1. Keep grid == #TCs.
    try:
        kind = jax.devices()[0].device_kind.lower()
    except Exception:
        return 1
    return 2 if ("v7" in kind or "7x" in kind) else 1


# -----------------------------------------------------------------------------
# Parameter construction (PyTorch weight conventions) and kernel-layout packing
# -----------------------------------------------------------------------------
def init_params(key, C, D, Dc):
    # GRN gamma/beta (torch init: zeros) and LayerScale gamma (init 1e-5) are
    # randomized here so the validation exercises every term of the math.
    ks = jax.random.split(key, 12)
    return dict(
        conv_ds_w=jax.random.normal(ks[0], (C, 1, 3, 3), jnp.float32) / 3.0,
        gn_g=1.0 + 0.1 * jax.random.normal(ks[1], (C,), jnp.float32),
        gn_b=0.1 * jax.random.normal(ks[2], (C,), jnp.float32),
        wq=jax.random.normal(ks[3], (D, D), jnp.float32) / math.sqrt(D),
        wk=jax.random.normal(ks[4], (D, Dc), jnp.float32) / math.sqrt(Dc),
        wv=jax.random.normal(ks[5], (D, Dc), jnp.float32) / math.sqrt(Dc),
        wo=jax.random.normal(ks[6], (D, D), jnp.float32) / math.sqrt(D),
        bo=0.1 * jax.random.normal(ks[7], (D,), jnp.float32),
        conv_1_w=jax.random.normal(ks[8], (C, C, 3, 3), jnp.float32) / (3.0 * math.sqrt(C)),
        grn_g=0.1 * jax.random.normal(ks[9], (C,), jnp.float32),
        grn_b=0.1 * jax.random.normal(ks[10], (C,), jnp.float32),
        ls_g=0.5 + 0.1 * jax.random.normal(ks[11], (C,), jnp.float32),
    )


def _build_masks(H, W):
    yy, xx = np.meshgrid(np.arange(H), np.arange(W), indexing="ij")
    rows = []
    for oy in (-1, 0, 1):
        for ox in (-1, 0, 1):
            valid = ((yy + oy >= 0) & (yy + oy < H) & (xx + ox >= 0) & (xx + ox < W))
            rows.append(valid.reshape(-1).astype(np.float32))
    return jnp.asarray(np.stack(rows, axis=0))           # (9, H*W)


def to_kernel_params(raw, C, H, W):
    D = H * W
    scale = 1.0 / math.sqrt(D)                            # dim_head ** -0.5
    hp = lax.Precision.HIGHEST
    # Depthwise taps: conv_ds_w[c, 0, ky, kx] -> wds[c, t], t = ky*3 + kx.
    wds = raw["conv_ds_w"][:, 0].reshape(C, 9)
    # One (C, 16) slab for all per-channel scalars (1 DMA instead of 6).
    small = jnp.zeros((C, 16), jnp.float32)
    small = small.at[:, 0:9].set(wds)
    small = small.at[:, 9].set(raw["gn_g"])
    small = small.at[:, 10].set(raw["gn_b"])
    small = small.at[:, 11].set(raw["grn_g"])
    small = small.at[:, 12].set(raw["grn_b"])
    small = small.at[:, 13].set(raw["ls_g"])
    # Folded attention projections (exact: heads=1, no nonlinearity in between).
    wqk = scale * jnp.dot(jnp.transpose(raw["wq"]), raw["wk"], precision=hp)      # (D, Dc)
    wvo = jnp.dot(jnp.transpose(raw["wv"]), jnp.transpose(raw["wo"]), precision=hp)  # (Dc, D)
    # conv_1 im2col slab: w1[o, t*C + i] = conv_1_w[o, i, ky, kx], t = ky*3 + kx.
    w1 = jnp.transpose(raw["conv_1_w"], (0, 2, 3, 1)).reshape(C, 9 * C)
    return dict(
        masks=_build_masks(H, W),
        small=small,
        wqk=wqk,
        wvo=wvo,
        bo=raw["bo"].reshape(1, D),
        w1=w1,
    )


# -----------------------------------------------------------------------------
# Pure-JAX reference (lax.conv / einsum, HIGHEST precision, exact-erf GELU)
# -----------------------------------------------------------------------------
def ref_forward(x, ctx, raw):
    B, C, H, W = x.shape
    HW = H * W
    D = HW
    scale = 1.0 / math.sqrt(D)
    dn = ("NCHW", "OIHW", "NCHW")
    hp = lax.Precision.HIGHEST

    h = lax.conv_general_dilated(x, raw["conv_ds_w"], (1, 1), [(1, 1), (1, 1)],
                                 dimension_numbers=dn, feature_group_count=C,
                                 precision=hp)
    mean = h.mean(axis=(1, 2, 3), keepdims=True)
    var = ((h - mean) ** 2).mean(axis=(1, 2, 3), keepdims=True)
    h = (h - mean) * lax.rsqrt(var + 1e-5)
    h = h * raw["gn_g"].reshape(1, C, 1, 1) + raw["gn_b"].reshape(1, C, 1, 1)

    hq = h.reshape(B, C, HW)
    c = ctx.reshape(B, ctx.shape[1], -1)
    q = jnp.einsum("bnd,od->bno", hq, raw["wq"], precision=hp)
    k = jnp.einsum("bmd,od->bmo", c, raw["wk"], precision=hp)
    v = jnp.einsum("bmd,od->bmo", c, raw["wv"], precision=hp)
    sim = jnp.einsum("bno,bmo->bnm", q, k, precision=hp) * scale
    attn = jax.nn.softmax(sim, axis=-1)
    a = jnp.einsum("bnm,bmo->bno", attn, v, precision=hp)
    a = jnp.einsum("bno,po->bnp", a, raw["wo"], precision=hp) + raw["bo"].reshape(1, 1, D)

    a = jax.nn.gelu(a, approximate=False)
    a = a.reshape(B, C, H, W)
    a = lax.conv_general_dilated(a, raw["conv_1_w"], (1, 1), [(1, 1), (1, 1)],
                                 dimension_numbers=dn, precision=hp)
    gx = jnp.sqrt(jnp.sum(a * a, axis=(2, 3), keepdims=True))
    nx = gx / (jnp.mean(gx, axis=1, keepdims=True) + 1e-6)
    a = raw["grn_g"].reshape(1, C, 1, 1) * (a * nx) + raw["grn_b"].reshape(1, C, 1, 1) + a
    a = a * raw["ls_g"].reshape(1, C, 1, 1)
    return a + x


# -----------------------------------------------------------------------------
if __name__ == "__main__":
    # input_channels=8, input_height=input_width=16 (dim = dim_head = 256);
    # context_dimension=(4, 8, 8) -> context tokens Nc=4, context_emb_dim Dc=64.
    B, C, H, W = 2, 8, 16, 16
    Cc, Hc, Wc = 4, 8, 8
    D = H * W
    Dc = Hc * Wc

    key = jax.random.PRNGKey(0)
    key, kx, kc = jax.random.split(key, 3)
    x = jax.random.normal(kx, (B, C, H, W), jnp.float32)
    ctx = jax.random.normal(kc, (B, Cc, Hc, Wc), jnp.float32)

    raw = init_params(key, C=C, D=D, Dc=Dc)
    kp = to_kernel_params(raw, C=C, H=H, W=W)

    # v7x: one sample per grid step (2-way TC parallelism); v5e/v6e: whole batch
    # in a single grid step (no per-step overhead, serial loop anyway).
    num_tc = _num_tensorcores_per_chip()
    if num_tc > 1 and B % num_tc == 0:
        sps = B // num_tc
    else:
        sps = B

    y = forward(x, ctx, kp, samples_per_step=sps)
    y = jax.block_until_ready(y)
    assert y.shape == (B, C, H, W), y.shape

    y_ref = ref_forward(x, ctx, raw)
    np.testing.assert_allclose(np.asarray(y), np.asarray(y_ref), rtol=2e-3, atol=2e-3)

    print("KERNEL_OK")
</pallas_src>

<mosaic_0001>
module attributes {stable_mosaic.version = 11 : i64} {
  func.func @kernel(%arg0: i32, %arg1: memref<2x8x256xf32, #tpu.memory_space<vmem>>, %arg2: memref<2x4x64xf32, #tpu.memory_space<vmem>>, %arg3: memref<2x64x4xf32, #tpu.memory_space<vmem>>, %arg4: memref<9x256xf32, #tpu.memory_space<vmem>>, %arg5: memref<8x16xf32, #tpu.memory_space<vmem>>, %arg6: memref<256x64xf32, #tpu.memory_space<vmem>>, %arg7: memref<64x256xf32, #tpu.memory_space<vmem>>, %arg8: memref<1x256xf32, #tpu.memory_space<vmem>>, %arg9: memref<8x72xf32, #tpu.memory_space<vmem>>, %arg10: memref<2x8x256xf32, #tpu.memory_space<vmem>>) attributes {dimension_semantics = [#tpu.dimension_semantics<parallel>], iteration_bounds = array<i64: 1>, scalar_prefetch = 0 : i64, scratch_operands = 0 : i64, tpu.core_type = #tpu.core_type<tc>, window_params = [{transform_indices = @transform_0, window_bounds = array<i64: 2, 8, 256>}, {transform_indices = @transform_1, window_bounds = array<i64: 2, 4, 64>}, {transform_indices = @transform_2, window_bounds = array<i64: 2, 64, 4>}, {pipeline_mode = #tpu.pipeline_mode<synchronous>, transform_indices = @transform_3, window_bounds = array<i64: 9, 256>}, {pipeline_mode = #tpu.pipeline_mode<synchronous>, transform_indices = @transform_4, window_bounds = array<i64: 8, 16>}, {pipeline_mode = #tpu.pipeline_mode<synchronous>, transform_indices = @transform_5, window_bounds = array<i64: 256, 64>}, {pipeline_mode = #tpu.pipeline_mode<synchronous>, transform_indices = @transform_6, window_bounds = array<i64: 64, 256>}, {pipeline_mode = #tpu.pipeline_mode<synchronous>, transform_indices = @transform_7, window_bounds = array<i64: 1, 256>}, {pipeline_mode = #tpu.pipeline_mode<synchronous>, transform_indices = @transform_8, window_bounds = array<i64: 8, 72>}, {transform_indices = @transform_9, window_bounds = array<i64: 2, 8, 256>}]} {
    %c0 = arith.constant 0 : index
    %c0_0 = arith.constant 0 : index
    %0 = vector.load %arg4[%c0, %c0_0] : memref<9x256xf32, #tpu.memory_space<vmem>>, vector<9x256xf32>
    %c0_1 = arith.constant 0 : index
    %c0_2 = arith.constant 0 : index
    %1 = vector.load %arg5[%c0_1, %c0_2] : memref<8x16xf32, #tpu.memory_space<vmem>>, vector<8x16xf32>
    %2 = vector.extract_strided_slice %1 {offsets = [0, 0], sizes = [8, 9], strides = [1, 1]} : vector<8x16xf32> to vector<8x9xf32>
    %3 = vector.extract_strided_slice %1 {offsets = [0, 9], sizes = [8, 1], strides = [1, 1]} : vector<8x16xf32> to vector<8x1xf32>
    %4 = vector.extract_strided_slice %1 {offsets = [0, 10], sizes = [8, 1], strides = [1, 1]} : vector<8x16xf32> to vector<8x1xf32>
    %5 = vector.extract_strided_slice %1 {offsets = [0, 11], sizes = [8, 1], strides = [1, 1]} : vector<8x16xf32> to vector<8x1xf32>
    %6 = vector.extract_strided_slice %1 {offsets = [0, 12], sizes = [8, 1], strides = [1, 1]} : vector<8x16xf32> to vector<8x1xf32>
    %7 = vector.extract_strided_slice %1 {offsets = [0, 13], sizes = [8, 1], strides = [1, 1]} : vector<8x16xf32> to vector<8x1xf32>
    %c0_3 = arith.constant 0 : index
    %c0_4 = arith.constant 0 : index
    %8 = vector.load %arg6[%c0_3, %c0_4] : memref<256x64xf32, #tpu.memory_space<vmem>>, vector<256x64xf32>
    %c0_5 = arith.constant 0 : index
    %c0_6 = arith.constant 0 : index
    %9 = vector.load %arg7[%c0_5, %c0_6] : memref<64x256xf32, #tpu.memory_space<vmem>>, vector<64x256xf32>
    %c0_7 = arith.constant 0 : index
    %c0_8 = arith.constant 0 : index
    %10 = vector.load %arg8[%c0_7, %c0_8] : memref<1x256xf32, #tpu.memory_space<vmem>>, vector<1x256xf32>
    %c0_9 = arith.constant 0 : index
    %c0_10 = arith.constant 0 : index
    %11 = vector.load %arg9[%c0_9, %c0_10] : memref<8x72xf32, #tpu.memory_space<vmem>>, vector<8x72xf32>
    %c0_11 = arith.constant 0 : index
    %c0_12 = arith.constant 0 : index
    %c0_13 = arith.constant 0 : index
    %12 = vector.load %arg1[%c0_11, %c0_12, %c0_13] : memref<2x8x256xf32, #tpu.memory_space<vmem>>, vector<1x8x256xf32>
    %13 = vector.shape_cast %12 : vector<1x8x256xf32> to vector<8x256xf32>
    %c0_14 = arith.constant 0 : index
    %c0_15 = arith.constant 0 : index
    %c0_16 = arith.constant 0 : index
    %14 = vector.load %arg2[%c0_14, %c0_15, %c0_16] : memref<2x4x64xf32, #tpu.memory_space<vmem>>, vector<1x4x64xf32>
    %15 = vector.shape_cast %14 : vector<1x4x64xf32> to vector<4x64xf32>
    %c0_17 = arith.constant 0 : index
    %c0_18 = arith.constant 0 : index
    %c0_19 = arith.constant 0 : index
    %16 = vector.load %arg3[%c0_17, %c0_18, %c0_19] : memref<2x64x4xf32, #tpu.memory_space<vmem>>, vector<1x64x4xf32>
    %17 = vector.shape_cast %16 : vector<1x64x4xf32> to vector<64x4xf32>
    %18 = vector.extract_strided_slice %2 {offsets = [0, 0], sizes = [8, 1], strides = [1, 1]} : vector<8x9xf32> to vector<8x1xf32>
    %19 = vector.extract_strided_slice %13 {offsets = [0, 239], sizes = [8, 17], strides = [1, 1]} : vector<8x256xf32> to vector<8x17xf32>
    %20 = vector.extract_strided_slice %13 {offsets = [0, 0], sizes = [8, 239], strides = [1, 1]} : vector<8x256xf32> to vector<8x239xf32>
    %21 = tpu.concatenate %19, %20 in 1 : vector<8x17xf32>, vector<8x239xf32> -> vector<8x256xf32>
    %22 = vector.extract_strided_slice %0 {offsets = [0, 0], sizes = [1, 256], strides = [1, 1]} : vector<9x256xf32> to vector<1x256xf32>
    %23 = vector.broadcast %22 : vector<1x256xf32> to vector<8x256xf32>
    %24 = arith.mulf %21, %23 : vector<8x256xf32>
    %25 = vector.broadcast %18 : vector<8x1xf32> to vector<8x256xf32>
    %26 = arith.mulf %25, %24 : vector<8x256xf32>
    %27 = vector.extract_strided_slice %2 {offsets = [0, 1], sizes = [8, 1], strides = [1, 1]} : vector<8x9xf32> to vector<8x1xf32>
    %28 = vector.extract_strided_slice %13 {offsets = [0, 240], sizes = [8, 16], strides = [1, 1]} : vector<8x256xf32> to vector<8x16xf32>
    %29 = vector.extract_strided_slice %13 {offsets = [0, 0], sizes = [8, 240], strides = [1, 1]} : vector<8x256xf32> to vector<8x240xf32>
    %30 = tpu.concatenate %28, %29 in 1 : vector<8x16xf32>, vector<8x240xf32> -> vector<8x256xf32>
    %31 = vector.extract_strided_slice %0 {offsets = [1, 0], sizes = [1, 256], strides = [1, 1]} : vector<9x256xf32> to vector<1x256xf32>
    %32 = vector.broadcast %31 : vector<1x256xf32> to vector<8x256xf32>
    %33 = arith.mulf %30, %32 : vector<8x256xf32>
    %34 = vector.broadcast %27 : vector<8x1xf32> to vector<8x256xf32>
    %35 = arith.mulf %34, %33 : vector<8x256xf32>
    %36 = arith.addf %26, %35 : vector<8x256xf32>
    %37 = vector.extract_strided_slice %2 {offsets = [0, 2], sizes = [8, 1], strides = [1, 1]} : vector<8x9xf32> to vector<8x1xf32>
    %38 = vector.extract_strided_slice %13 {offsets = [0, 241], sizes = [8, 15], strides = [1, 1]} : vector<8x256xf32> to vector<8x15xf32>
    %39 = vector.extract_strided_slice %13 {offsets = [0, 0], sizes = [8, 241], strides = [1, 1]} : vector<8x256xf32> to vector<8x241xf32>
    %40 = tpu.concatenate %38, %39 in 1 : vector<8x15xf32>, vector<8x241xf32> -> vector<8x256xf32>
    %41 = vector.extract_strided_slice %0 {offsets = [2, 0], sizes = [1, 256], strides = [1, 1]} : vector<9x256xf32> to vector<1x256xf32>
    %42 = vector.broadcast %41 : vector<1x256xf32> to vector<8x256xf32>
    %43 = arith.mulf %40, %42 : vector<8x256xf32>
    %44 = vector.broadcast %37 : vector<8x1xf32> to vector<8x256xf32>
    %45 = arith.mulf %44, %43 : vector<8x256xf32>
    %46 = arith.addf %36, %45 : vector<8x256xf32>
    %47 = vector.extract_strided_slice %2 {offsets = [0, 3], sizes = [8, 1], strides = [1, 1]} : vector<8x9xf32> to vector<8x1xf32>
    %48 = vector.extract_strided_slice %13 {offsets = [0, 255], sizes = [8, 1], strides = [1, 1]} : vector<8x256xf32> to vector<8x1xf32>
    %49 = vector.extract_strided_slice %13 {offsets = [0, 0], sizes = [8, 255], strides = [1, 1]} : vector<8x256xf32> to vector<8x255xf32>
    %50 = tpu.concatenate %48, %49 in 1 : vector<8x1xf32>, vector<8x255xf32> -> vector<8x256xf32>
    %51 = vector.extract_strided_slice %0 {offsets = [3, 0], sizes = [1, 256], strides = [1, 1]} : vector<9x256xf32> to vector<1x256xf32>
    %52 = vector.broadcast %51 : vector<1x256xf32> to vector<8x256xf32>
    %53 = arith.mulf %50, %52 : vector<8x256xf32>
    %54 = vector.broadcast %47 : vector<8x1xf32> to vector<8x256xf32>
    %55 = arith.mulf %54, %53 : vector<8x256xf32>
    %56 = arith.addf %46, %55 : vector<8x256xf32>
    %57 = vector.extract_strided_slice %2 {offsets = [0, 4], sizes = [8, 1], strides = [1, 1]} : vector<8x9xf32> to vector<8x1xf32>
    %58 = vector.extract_strided_slice %0 {offsets = [4, 0], sizes = [1, 256], strides = [1, 1]} : vector<9x256xf32> to vector<1x256xf32>
    %59 = vector.broadcast %58 : vector<1x256xf32> to vector<8x256xf32>
    %60 = arith.mulf %13, %59 : vector<8x256xf32>
    %61 = vector.broadcast %57 : vector<8x1xf32> to vector<8x256xf32>
    %62 = arith.mulf %61, %60 : vector<8x256xf32>
    %63 = arith.addf %56, %62 : vector<8x256xf32>
    %64 = vector.extract_strided_slice %2 {offsets = [0, 5], sizes = [8, 1], strides = [1, 1]} : vector<8x9xf32> to vector<8x1xf32>
    %65 = vector.extract_strided_slice %13 {offsets = [0, 1], sizes = [8, 255], strides = [1, 1]} : vector<8x256xf32> to vector<8x255xf32>
    %66 = vector.extract_strided_slice %13 {offsets = [0, 0], sizes = [8, 1], strides = [1, 1]} : vector<8x256xf32> to vector<8x1xf32>
    %67 = tpu.concatenate %65, %66 in 1 : vector<8x255xf32>, vector<8x1xf32> -> vector<8x256xf32>
    %68 = vector.extract_strided_slice %0 {offsets = [5, 0], sizes = [1, 256], strides = [1, 1]} : vector<9x256xf32> to vector<1x256xf32>
    %69 = vector.broadcast %68 : vector<1x256xf32> to vector<8x256xf32>
    %70 = arith.mulf %67, %69 : vector<8x256xf32>
    %71 = vector.broadcast %64 : vector<8x1xf32> to vector<8x256xf32>
    %72 = arith.mulf %71, %70 : vector<8x256xf32>
    %73 = arith.addf %63, %72 : vector<8x256xf32>
    %74 = vector.extract_strided_slice %2 {offsets = [0, 6], sizes = [8, 1], strides = [1, 1]} : vector<8x9xf32> to vector<8x1xf32>
    %75 = vector.extract_strided_slice %13 {offsets = [0, 15], sizes = [8, 241], strides = [1, 1]} : vector<8x256xf32> to vector<8x241xf32>
    %76 = vector.extract_strided_slice %13 {offsets = [0, 0], sizes = [8, 15], strides = [1, 1]} : vector<8x256xf32> to vector<8x15xf32>
    %77 = tpu.concatenate %75, %76 in 1 : vector<8x241xf32>, vector<8x15xf32> -> vector<8x256xf32>
    %78 = vector.extract_strided_slice %0 {offsets = [6, 0], sizes = [1, 256], strides = [1, 1]} : vector<9x256xf32> to vector<1x256xf32>
    %79 = vector.broadcast %78 : vector<1x256xf32> to vector<8x256xf32>
    %80 = arith.mulf %77, %79 : vector<8x256xf32>
    %81 = vector.broadcast %74 : vector<8x1xf32> to vector<8x256xf32>
    %82 = arith.mulf %81, %80 : vector<8x256xf32>
    %83 = arith.addf %73, %82 : vector<8x256xf32>
    %84 = vector.extract_strided_slice %2 {offsets = [0, 7], sizes = [8, 1], strides = [1, 1]} : vector<8x9xf32> to vector<8x1xf32>
    %85 = vector.extract_strided_slice %13 {offsets = [0, 16], sizes = [8, 240], strides = [1, 1]} : vector<8x256xf32> to vector<8x240xf32>
    %86 = vector.extract_strided_slice %13 {offsets = [0, 0], sizes = [8, 16], strides = [1, 1]} : vector<8x256xf32> to vector<8x16xf32>
    %87 = tpu.concatenate %85, %86 in 1 : vector<8x240xf32>, vector<8x16xf32> -> vector<8x256xf32>
    %88 = vector.extract_strided_slice %0 {offsets = [7, 0], sizes = [1, 256], strides = [1, 1]} : vector<9x256xf32> to vector<1x256xf32>
    %89 = vector.broadcast %88 : vector<1x256xf32> to vector<8x256xf32>
    %90 = arith.mulf %87, %89 : vector<8x256xf32>
    %91 = vector.broadcast %84 : vector<8x1xf32> to vector<8x256xf32>
    %92 = arith.mulf %91, %90 : vector<8x256xf32>
    %93 = arith.addf %83, %92 : vector<8x256xf32>
    %94 = vector.extract_strided_slice %2 {offsets = [0, 8], sizes = [8, 1], strides = [1, 1]} : vector<8x9xf32> to vector<8x1xf32>
    %95 = vector.extract_strided_slice %13 {offsets = [0, 17], sizes = [8, 239], strides = [1, 1]} : vector<8x256xf32> to vector<8x239xf32>
    %96 = vector.extract_strided_slice %13 {offsets = [0, 0], sizes = [8, 17], strides = [1, 1]} : vector<8x256xf32> to vector<8x17xf32>
    %97 = tpu.concatenate %95, %96 in 1 : vector<8x239xf32>, vector<8x17xf32> -> vector<8x256xf32>
    %98 = vector.extract_strided_slice %0 {offsets = [8, 0], sizes = [1, 256], strides = [1, 1]} : vector<9x256xf32> to vector<1x256xf32>
    %99 = vector.broadcast %98 : vector<1x256xf32> to vector<8x256xf32>
    %100 = arith.mulf %97, %99 : vector<8x256xf32>
    %101 = vector.broadcast %94 : vector<8x1xf32> to vector<8x256xf32>
    %102 = arith.mulf %101, %100 : vector<8x256xf32>
    %103 = arith.addf %93, %102 : vector<8x256xf32>
    %104 = vector.shape_cast %103 : vector<8x256xf32> to vector<1x8x256xf32>
    %cst = arith.constant dense<0.000000e+00> : vector<1xf32>
    %105 = vector.multi_reduction <add>, %104, %cst [1, 2] : vector<1x8x256xf32> to vector<1xf32>
    %106 = vector.shape_cast %105 : vector<1xf32> to vector<1x1x1xf32>
    %107 = vector.extract %106[0, 0, 0] : f32 from vector<1x1x1xf32>
    %108 = vector.broadcast %107 : f32 to vector<1x1xf32>
    %cst_20 = arith.constant 2.048000e+03 : f32
    %109 = vector.broadcast %cst_20 : f32 to vector<1x1xf32>
    %110 = arith.divf %108, %109 : vector<1x1xf32>
    %111 = vector.broadcast %110 : vector<1x1xf32> to vector<8x256xf32>
    %112 = arith.subf %103, %111 : vector<8x256xf32>
    %113 = arith.mulf %112, %112 : vector<8x256xf32>
    %114 = vector.shape_cast %113 : vector<8x256xf32> to vector<1x8x256xf32>
    %cst_21 = arith.constant dense<0.000000e+00> : vector<1xf32>
    %115 = vector.multi_reduction <add>, %114, %cst_21 [1, 2] : vector<1x8x256xf32> to vector<1xf32>
    %116 = vector.shape_cast %115 : vector<1xf32> to vector<1x1x1xf32>
    %117 = vector.extract %116[0, 0, 0] : f32 from vector<1x1x1xf32>
    %118 = vector.broadcast %117 : f32 to vector<1x1xf32>
    %cst_22 = arith.constant 2.048000e+03 : f32
    %119 = vector.broadcast %cst_22 : f32 to vector<1x1xf32>
    %120 = arith.divf %118, %119 : vector<1x1xf32>
    %121 = vector.broadcast %110 : vector<1x1xf32> to vector<8x256xf32>
    %122 = arith.subf %103, %121 : vector<8x256xf32>
    %cst_23 = arith.constant 9.99999974E-6 : f32
    %123 = vector.broadcast %cst_23 : f32 to vector<1x1xf32>
    %124 = arith.addf %120, %123 : vector<1x1xf32>
    %125 = math.rsqrt %124 : vector<1x1xf32>
    %126 = vector.broadcast %125 : vector<1x1xf32> to vector<8x256xf32>
    %127 = arith.mulf %122, %126 : vector<8x256xf32>
    %128 = vector.broadcast %3 : vector<8x1xf32> to vector<8x256xf32>
    %129 = arith.mulf %127, %128 : vector<8x256xf32>
    %130 = vector.broadcast %4 : vector<8x1xf32> to vector<8x256xf32>
    %131 = arith.addf %129, %130 : vector<8x256xf32>
    %cst_24 = arith.constant dense<0.000000e+00> : vector<8x64xf32>
    %132 = tpu.matmul %131, %8, %cst_24 {dimension_numbers = #tpu.dot_dimension_numbers<[1], [0], [0], [1], [0, 0, 1, 1], [], []>} : vector<8x256xf32>, vector<256x64xf32>, vector<8x64xf32> -> vector<8x64xf32>
    %cst_25 = arith.constant dense<0.000000e+00> : vector<8x4xf32>
    %133 = tpu.matmul %132, %17, %cst_25 {dimension_numbers = #tpu.dot_dimension_numbers<[1], [0], [0], [1], [0, 0, 1, 1], [], []>} : vector<8x64xf32>, vector<64x4xf32>, vector<8x4xf32> -> vector<8x4xf32>
    %cst_26 = arith.constant dense<0xFF800000> : vector<8xf32>
    %134 = vector.multi_reduction <maximumf>, %133, %cst_26 [1] : vector<8x4xf32> to vector<8xf32>
    %135 = vector.shape_cast %134 : vector<8xf32> to vector<8x1xf32>
    %136 = vector.broadcast %135 : vector<8x1xf32> to vector<8x4xf32>
    %137 = arith.subf %133, %136 : vector<8x4xf32>
    %138 = math.exp %137 : vector<8x4xf32>
    %cst_27 = arith.constant dense<0.000000e+00> : vector<8xf32>
    %139 = vector.multi_reduction <add>, %138, %cst_27 [1] : vector<8x4xf32> to vector<8xf32>
    %140 = vector.shape_cast %139 : vector<8xf32> to vector<8x1xf32>
    %141 = tpu.reciprocal %140 {approx = true} : vector<8x1xf32> -> vector<8x1xf32>
    %142 = vector.broadcast %141 : vector<8x1xf32> to vector<8x4xf32>
    %143 = arith.mulf %138, %142 : vector<8x4xf32>
    %cst_28 = arith.constant dense<0.000000e+00> : vector<4x256xf32>
    %144 = tpu.matmul %15, %9, %cst_28 {dimension_numbers = #tpu.dot_dimension_numbers<[1], [0], [0], [1], [0, 0, 1, 1], [], []>} : vector<4x64xf32>, vector<64x256xf32>, vector<4x256xf32> -> vector<4x256xf32>
    %cst_29 = arith.constant dense<0.000000e+00> : vector<8x256xf32>
    %145 = tpu.matmul %143, %144, %cst_29 {dimension_numbers = #tpu.dot_dimension_numbers<[1], [0], [0], [1], [0, 0, 1, 1], [], []>} : vector<8x4xf32>, vector<4x256xf32>, vector<8x256xf32> -> vector<8x256xf32>
    %146 = vector.broadcast %10 : vector<1x256xf32> to vector<8x256xf32>
    %147 = arith.addf %145, %146 : vector<8x256xf32>
    %cst_30 = arith.constant 5.000000e-01 : f32
    %148 = vector.broadcast %cst_30 : f32 to vector<8x256xf32>
    %149 = arith.mulf %148, %147 : vector<8x256xf32>
    %cst_31 = arith.constant 0.707106769 : f32
    %150 = vector.broadcast %cst_31 : f32 to vector<8x256xf32>
    %151 = arith.mulf %147, %150 : vector<8x256xf32>
    %cst_32 = arith.constant 0.000000e+00 : f32
    %152 = vector.broadcast %cst_32 : f32 to vector<8x256xf32>
    %153 = arith.cmpf oge, %151, %152 : vector<8x256xf32>
    %cst_33 = arith.constant 1.000000e+00 : f32
    %cst_34 = arith.constant -1.000000e+00 : f32
    %154 = vector.broadcast %cst_33 : f32 to vector<8x256xf32>
    %155 = vector.broadcast %cst_34 : f32 to vector<8x256xf32>
    %156 = arith.select %153, %154, %155 : vector<8x256xi1>, vector<8x256xf32>
    %157 = math.absf %151 : vector<8x256xf32>
    %cst_35 = arith.constant 0.327591091 : f32
    %158 = vector.broadcast %cst_35 : f32 to vector<8x256xf32>
    %159 = arith.mulf %158, %157 : vector<8x256xf32>
    %cst_36 = arith.constant 1.000000e+00 : f32
    %160 = vector.broadcast %cst_36 : f32 to vector<8x256xf32>
    %161 = arith.addf %160, %159 : vector<8x256xf32>
    %cst_37 = arith.constant 1.000000e+00 : f32
    %162 = vector.broadcast %cst_37 : f32 to vector<8x256xf32>
    %163 = arith.divf %162, %161 : vector<8x256xf32>
    %cst_38 = arith.constant 1.06140542 : f32
    %164 = vector.broadcast %cst_38 : f32 to vector<8x256xf32>
    %165 = arith.mulf %164, %163 : vector<8x256xf32>
    %cst_39 = arith.constant -1.45315206 : f32
    %166 = vector.broadcast %cst_39 : f32 to vector<8x256xf32>
    %167 = arith.addf %165, %166 : vector<8x256xf32>
    %168 = arith.mulf %167, %163 : vector<8x256xf32>
    %cst_40 = arith.constant 1.42141378 : f32
    %169 = vector.broadcast %cst_40 : f32 to vector<8x256xf32>
    %170 = arith.addf %168, %169 : vector<8x256xf32>
    %171 = arith.mulf %170, %163 : vector<8x256xf32>
    %cst_41 = arith.constant -0.284496725 : f32
    %172 = vector.broadcast %cst_41 : f32 to vector<8x256xf32>
    %173 = arith.addf %171, %172 : vector<8x256xf32>
    %174 = arith.mulf %173, %163 : vector<8x256xf32>
    %cst_42 = arith.constant 0.254829586 : f32
    %175 = vector.broadcast %cst_42 : f32 to vector<8x256xf32>
    %176 = arith.addf %174, %175 : vector<8x256xf32>
    %177 = arith.mulf %176, %163 : vector<8x256xf32>
    %cst_43 = arith.constant 0.000000e+00 : f32
    %178 = vector.broadcast %cst_43 : f32 to vector<8x256xf32>
    %179 = arith.subf %178, %157 : vector<8x256xf32>
    %180 = arith.mulf %179, %157 : vector<8x256xf32>
    %181 = math.exp %180 : vector<8x256xf32>
    %182 = arith.mulf %177, %181 : vector<8x256xf32>
    %cst_44 = arith.constant 1.000000e+00 : f32
    %183 = vector.broadcast %cst_44 : f32 to vector<8x256xf32>
    %184 = arith.subf %183, %182 : vector<8x256xf32>
    %185 = arith.mulf %156, %184 : vector<8x256xf32>
    %cst_45 = arith.constant 1.000000e+00 : f32
    %186 = vector.broadcast %cst_45 : f32 to vector<8x256xf32>
    %187 = arith.addf %186, %185 : vector<8x256xf32>
    %188 = arith.mulf %149, %187 : vector<8x256xf32>
    %189 = vector.extract_strided_slice %188 {offsets = [0, 239], sizes = [8, 17], strides = [1, 1]} : vector<8x256xf32> to vector<8x17xf32>
    %190 = vector.extract_strided_slice %188 {offsets = [0, 0], sizes = [8, 239], strides = [1, 1]} : vector<8x256xf32> to vector<8x239xf32>
    %191 = tpu.concatenate %189, %190 in 1 : vector<8x17xf32>, vector<8x239xf32> -> vector<8x256xf32>
    %192 = vector.extract_strided_slice %0 {offsets = [0, 0], sizes = [1, 256], strides = [1, 1]} : vector<9x256xf32> to vector<1x256xf32>
    %193 = vector.broadcast %192 : vector<1x256xf32> to vector<8x256xf32>
    %194 = arith.mulf %191, %193 : vector<8x256xf32>
    %195 = vector.extract_strided_slice %188 {offsets = [0, 240], sizes = [8, 16], strides = [1, 1]} : vector<8x256xf32> to vector<8x16xf32>
    %196 = vector.extract_strided_slice %188 {offsets = [0, 0], sizes = [8, 240], strides = [1, 1]} : vector<8x256xf32> to vector<8x240xf32>
    %197 = tpu.concatenate %195, %196 in 1 : vector<8x16xf32>, vector<8x240xf32> -> vector<8x256xf32>
    %198 = vector.extract_strided_slice %0 {offsets = [1, 0], sizes = [1, 256], strides = [1, 1]} : vector<9x256xf32> to vector<1x256xf32>
    %199 = vector.broadcast %198 : vector<1x256xf32> to vector<8x256xf32>
    %200 = arith.mulf %197, %199 : vector<8x256xf32>
    %201 = vector.extract_strided_slice %188 {offsets = [0, 241], sizes = [8, 15], strides = [1, 1]} : vector<8x256xf32> to vector<8x15xf32>
    %202 = vector.extract_strided_slice %188 {offsets = [0, 0], sizes = [8, 241], strides = [1, 1]} : vector<8x256xf32> to vector<8x241xf32>
    %203 = tpu.concatenate %201, %202 in 1 : vector<8x15xf32>, vector<8x241xf32> -> vector<8x256xf32>
    %204 = vector.extract_strided_slice %0 {offsets = [2, 0], sizes = [1, 256], strides = [1, 1]} : vector<9x256xf32> to vector<1x256xf32>
    %205 = vector.broadcast %204 : vector<1x256xf32> to vector<8x256xf32>
    %206 = arith.mulf %203, %205 : vector<8x256xf32>
    %207 = vector.extract_strided_slice %188 {offsets = [0, 255], sizes = [8, 1], strides = [1, 1]} : vector<8x256xf32> to vector<8x1xf32>
    %208 = vector.extract_strided_slice %188 {offsets = [0, 0], sizes = [8, 255], strides = [1, 1]} : vector<8x256xf32> to vector<8x255xf32>
    %209 = tpu.concatenate %207, %208 in 1 : vector<8x1xf32>, vector<8x255xf32> -> vector<8x256xf32>
    %210 = vector.extract_strided_slice %0 {offsets = [3, 0], sizes = [1, 256], strides = [1, 1]} : vector<9x256xf32> to vector<1x256xf32>
    %211 = vector.broadcast %210 : vector<1x256xf32> to vector<8x256xf32>
    %212 = arith.mulf %209, %211 : vector<8x256xf32>
    %213 = vector.extract_strided_slice %0 {offsets = [4, 0], sizes = [1, 256], strides = [1, 1]} : vector<9x256xf32> to vector<1x256xf32>
    %214 = vector.broadcast %213 : vector<1x256xf32> to vector<8x256xf32>
    %215 = arith.mulf %188, %214 : vector<8x256xf32>
    %216 = vector.extract_strided_slice %188 {offsets = [0, 1], sizes = [8, 255], strides = [1, 1]} : vector<8x256xf32> to vector<8x255xf32>
    %217 = vector.extract_strided_slice %188 {offsets = [0, 0], sizes = [8, 1], strides = [1, 1]} : vector<8x256xf32> to vector<8x1xf32>
    %218 = tpu.concatenate %216, %217 in 1 : vector<8x255xf32>, vector<8x1xf32> -> vector<8x256xf32>
    %219 = vector.extract_strided_slice %0 {offsets = [5, 0], sizes = [1, 256], strides = [1, 1]} : vector<9x256xf32> to vector<1x256xf32>
    %220 = vector.broadcast %219 : vector<1x256xf32> to vector<8x256xf32>
    %221 = arith.mulf %218, %220 : vector<8x256xf32>
    %222 = vector.extract_strided_slice %188 {offsets = [0, 15], sizes = [8, 241], strides = [1, 1]} : vector<8x256xf32> to vector<8x241xf32>
    %223 = vector.extract_strided_slice %188 {offsets = [0, 0], sizes = [8, 15], strides = [1, 1]} : vector<8x256xf32> to vector<8x15xf32>
    %224 = tpu.concatenate %222, %223 in 1 : vector<8x241xf32>, vector<8x15xf32> -> vector<8x256xf32>
    %225 = vector.extract_strided_slice %0 {offsets = [6, 0], sizes = [1, 256], strides = [1, 1]} : vector<9x256xf32> to vector<1x256xf32>
    %226 = vector.broadcast %225 : vector<1x256xf32> to vector<8x256xf32>
    %227 = arith.mulf %224, %226 : vector<8x256xf32>
    %228 = vector.extract_strided_slice %188 {offsets = [0, 16], sizes = [8, 240], strides = [1, 1]} : vector<8x256xf32> to vector<8x240xf32>
    %229 = vector.extract_strided_slice %188 {offsets = [0, 0], sizes = [8, 16], strides = [1, 1]} : vector<8x256xf32> to vector<8x16xf32>
    %230 = tpu.concatenate %228, %229 in 1 : vector<8x240xf32>, vector<8x16xf32> -> vector<8x256xf32>
    %231 = vector.extract_strided_slice %0 {offsets = [7, 0], sizes = [1, 256], strides = [1, 1]} : vector<9x256xf32> to vector<1x256xf32>
    %232 = vector.broadcast %231 : vector<1x256xf32> to vector<8x256xf32>
    %233 = arith.mulf %230, %232 : vector<8x256xf32>
    %234 = vector.extract_strided_slice %188 {offsets = [0, 17], sizes = [8, 239], strides = [1, 1]} : vector<8x256xf32> to vector<8x239xf32>
    %235 = vector.extract_strided_slice %188 {offsets = [0, 0], sizes = [8, 17], strides = [1, 1]} : vector<8x256xf32> to vector<8x17xf32>
    %236 = tpu.concatenate %234, %235 in 1 : vector<8x239xf32>, vector<8x17xf32> -> vector<8x256xf32>
    %237 = vector.extract_strided_slice %0 {offsets = [8, 0], sizes = [1, 256], strides = [1, 1]} : vector<9x256xf32> to vector<1x256xf32>
    %238 = vector.broadcast %237 : vector<1x256xf32> to vector<8x256xf32>
    %239 = arith.mulf %236, %238 : vector<8x256xf32>
    %240 = tpu.concatenate %194, %200, %206, %212, %215, %221, %227, %233, %239 in 0 : vector<8x256xf32>, vector<8x256xf32>, vector<8x256xf32>, vector<8x256xf32>, vector<8x256xf32>, vector<8x256xf32>, vector<8x256xf32>, vector<8x256xf32>, vector<8x256xf32> -> vector<72x256xf32>
    %cst_46 = arith.constant dense<0.000000e+00> : vector<8x256xf32>
    %241 = tpu.matmul %11, %240, %cst_46 {dimension_numbers = #tpu.dot_dimension_numbers<[1], [0], [0], [1], [0, 0, 1, 1], [], []>} : vector<8x72xf32>, vector<72x256xf32>, vector<8x256xf32> -> vector<8x256xf32>
    %242 = arith.mulf %241, %241 : vector<8x256xf32>
    %cst_47 = arith.constant dense<0.000000e+00> : vector<8xf32>
    %243 = vector.multi_reduction <add>, %242, %cst_47 [1] : vector<8x256xf32> to vector<8xf32>
    %244 = vector.shape_cast %243 : vector<8xf32> to vector<8x1xf32>
    %245 = math.sqrt %244 : vector<8x1xf32>
    %cst_48 = arith.constant dense<0.000000e+00> : vector<1xf32>
    %246 = vector.multi_reduction <add>, %245, %cst_48 [0] : vector<8x1xf32> to vector<1xf32>
    %247 = vector.shape_cast %246 : vector<1xf32> to vector<1x1xf32>
    %cst_49 = arith.constant 8.000000e+00 : f32
    %248 = vector.broadcast %cst_49 : f32 to vector<1x1xf32>
    %249 = arith.divf %247, %248 : vector<1x1xf32>
    %cst_50 = arith.constant 9.99999997E-7 : f32
    %250 = vector.broadcast %cst_50 : f32 to vector<1x1xf32>
    %251 = arith.addf %249, %250 : vector<1x1xf32>
    %252 = tpu.reciprocal %251 {approx = true} : vector<1x1xf32> -> vector<1x1xf32>
    %253 = vector.broadcast %252 : vector<1x1xf32> to vector<8x1xf32>
    %254 = arith.mulf %245, %253 : vector<8x1xf32>
    %255 = vector.broadcast %254 : vector<8x1xf32> to vector<8x256xf32>
    %256 = arith.mulf %241, %255 : vector<8x256xf32>
    %257 = vector.broadcast %5 : vector<8x1xf32> to vector<8x256xf32>
    %258 = arith.mulf %257, %256 : vector<8x256xf32>
    %259 = vector.broadcast %6 : vector<8x1xf32> to vector<8x256xf32>
    %260 = arith.addf %258, %259 : vector<8x256xf32>
    %261 = arith.addf %260, %241 : vector<8x256xf32>
    %262 = vector.broadcast %7 : vector<8x1xf32> to vector<8x256xf32>
    %263 = arith.mulf %261, %262 : vector<8x256xf32>
    %264 = arith.addf %263, %13 : vector<8x256xf32>
    %c0_51 = arith.constant 0 : index
    %c0_52 = arith.constant 0 : index
    %c0_53 = arith.constant 0 : index
    %265 = vector.load %arg10[%c0_51, %c0_52, %c0_53] : memref<2x8x256xf32, #tpu.memory_space<vmem>>, vector<1x8x256xf32>
    %266 = vector.shape_cast %265 : vector<1x8x256xf32> to vector<8x256xf32>
    %267 = vector.shape_cast %264 : vector<8x256xf32> to vector<1x8x256xf32>
    tpu.vector_store %arg10[%c0_51, %c0_52, %c0_53], %267 {strides = array<i32>} : memref<2x8x256xf32, #tpu.memory_space<vmem>>, vector<1x8x256xf32>,
    %c1 = arith.constant 1 : index
    %c0_54 = arith.constant 0 : index
    %c0_55 = arith.constant 0 : index
    %268 = vector.load %arg1[%c1, %c0_54, %c0_55] : memref<2x8x256xf32, #tpu.memory_space<vmem>>, vector<1x8x256xf32>
    %269 = vector.shape_cast %268 : vector<1x8x256xf32> to vector<8x256xf32>
    %c1_56 = arith.constant 1 : index
    %c0_57 = arith.constant 0 : index
    %c0_58 = arith.constant 0 : index
    %270 = vector.load %arg2[%c1_56, %c0_57, %c0_58] : memref<2x4x64xf32, #tpu.memory_space<vmem>>, vector<1x4x64xf32>
    %271 = vector.shape_cast %270 : vector<1x4x64xf32> to vector<4x64xf32>
    %c1_59 = arith.constant 1 : index
    %c0_60 = arith.constant 0 : index
    %c0_61 = arith.constant 0 : index
    %272 = vector.load %arg3[%c1_59, %c0_60, %c0_61] : memref<2x64x4xf32, #tpu.memory_space<vmem>>, vector<1x64x4xf32>
    %273 = vector.shape_cast %272 : vector<1x64x4xf32> to vector<64x4xf32>
    %274 = vector.extract_strided_slice %2 {offsets = [0, 0], sizes = [8, 1], strides = [1, 1]} : vector<8x9xf32> to vector<8x1xf32>
    %275 = vector.extract_strided_slice %269 {offsets = [0, 239], sizes = [8, 17], strides = [1, 1]} : vector<8x256xf32> to vector<8x17xf32>
    %276 = vector.extract_strided_slice %269 {offsets = [0, 0], sizes = [8, 239], strides = [1, 1]} : vector<8x256xf32> to vector<8x239xf32>
    %277 = tpu.concatenate %275, %276 in 1 : vector<8x17xf32>, vector<8x239xf32> -> vector<8x256xf32>
    %278 = vector.extract_strided_slice %0 {offsets = [0, 0], sizes = [1, 256], strides = [1, 1]} : vector<9x256xf32> to vector<1x256xf32>
    %279 = vector.broadcast %278 : vector<1x256xf32> to vector<8x256xf32>
    %280 = arith.mulf %277, %279 : vector<8x256xf32>
    %281 = vector.broadcast %274 : vector<8x1xf32> to vector<8x256xf32>
    %282 = arith.mulf %281, %280 : vector<8x256xf32>
    %283 = vector.extract_strided_slice %2 {offsets = [0, 1], sizes = [8, 1], strides = [1, 1]} : vector<8x9xf32> to vector<8x1xf32>
    %284 = vector.extract_strided_slice %269 {offsets = [0, 240], sizes = [8, 16], strides = [1, 1]} : vector<8x256xf32> to vector<8x16xf32>
    %285 = vector.extract_strided_slice %269 {offsets = [0, 0], sizes = [8, 240], strides = [1, 1]} : vector<8x256xf32> to vector<8x240xf32>
    %286 = tpu.concatenate %284, %285 in 1 : vector<8x16xf32>, vector<8x240xf32> -> vector<8x256xf32>
    %287 = vector.extract_strided_slice %0 {offsets = [1, 0], sizes = [1, 256], strides = [1, 1]} : vector<9x256xf32> to vector<1x256xf32>
    %288 = vector.broadcast %287 : vector<1x256xf32> to vector<8x256xf32>
    %289 = arith.mulf %286, %288 : vector<8x256xf32>
    %290 = vector.broadcast %283 : vector<8x1xf32> to vector<8x256xf32>
    %291 = arith.mulf %290, %289 : vector<8x256xf32>
    %292 = arith.addf %282, %291 : vector<8x256xf32>
    %293 = vector.extract_strided_slice %2 {offsets = [0, 2], sizes = [8, 1], strides = [1, 1]} : vector<8x9xf32> to vector<8x1xf32>
    %294 = vector.extract_strided_slice %269 {offsets = [0, 241], sizes = [8, 15], strides = [1, 1]} : vector<8x256xf32> to vector<8x15xf32>
    %295 = vector.extract_strided_slice %269 {offsets = [0, 0], sizes = [8, 241], strides = [1, 1]} : vector<8x256xf32> to vector<8x241xf32>
    %296 = tpu.concatenate %294, %295 in 1 : vector<8x15xf32>, vector<8x241xf32> -> vector<8x256xf32>
    %297 = vector.extract_strided_slice %0 {offsets = [2, 0], sizes = [1, 256], strides = [1, 1]} : vector<9x256xf32> to vector<1x256xf32>
    %298 = vector.broadcast %297 : vector<1x256xf32> to vector<8x256xf32>
    %299 = arith.mulf %296, %298 : vector<8x256xf32>
    %300 = vector.broadcast %293 : vector<8x1xf32> to vector<8x256xf32>
    %301 = arith.mulf %300, %299 : vector<8x256xf32>
    %302 = arith.addf %292, %301 : vector<8x256xf32>
    %303 = vector.extract_strided_slice %2 {offsets = [0, 3], sizes = [8, 1], strides = [1, 1]} : vector<8x9xf32> to vector<8x1xf32>
    %304 = vector.extract_strided_slice %269 {offsets = [0, 255], sizes = [8, 1], strides = [1, 1]} : vector<8x256xf32> to vector<8x1xf32>
    %305 = vector.extract_strided_slice %269 {offsets = [0, 0], sizes = [8, 255], strides = [1, 1]} : vector<8x256xf32> to vector<8x255xf32>
    %306 = tpu.concatenate %304, %305 in 1 : vector<8x1xf32>, vector<8x255xf32> -> vector<8x256xf32>
    %307 = vector.extract_strided_slice %0 {offsets = [3, 0], sizes = [1, 256], strides = [1, 1]} : vector<9x256xf32> to vector<1x256xf32>
    %308 = vector.broadcast %307 : vector<1x256xf32> to vector<8x256xf32>
    %309 = arith.mulf %306, %308 : vector<8x256xf32>
    %310 = vector.broadcast %303 : vector<8x1xf32> to vector<8x256xf32>
    %311 = arith.mulf %310, %309 : vector<8x256xf32>
    %312 = arith.addf %302, %311 : vector<8x256xf32>
    %313 = vector.extract_strided_slice %2 {offsets = [0, 4], sizes = [8, 1], strides = [1, 1]} : vector<8x9xf32> to vector<8x1xf32>
    %314 = vector.extract_strided_slice %0 {offsets = [4, 0], sizes = [1, 256], strides = [1, 1]} : vector<9x256xf32> to vector<1x256xf32>
    %315 = vector.broadcast %314 : vector<1x256xf32> to vector<8x256xf32>
    %316 = arith.mulf %269, %315 : vector<8x256xf32>
    %317 = vector.broadcast %313 : vector<8x1xf32> to vector<8x256xf32>
    %318 = arith.mulf %317, %316 : vector<8x256xf32>
    %319 = arith.addf %312, %318 : vector<8x256xf32>
    %320 = vector.extract_strided_slice %2 {offsets = [0, 5], sizes = [8, 1], strides = [1, 1]} : vector<8x9xf32> to vector<8x1xf32>
    %321 = vector.extract_strided_slice %269 {offsets = [0, 1], sizes = [8, 255], strides = [1, 1]} : vector<8x256xf32> to vector<8x255xf32>
    %322 = vector.extract_strided_slice %269 {offsets = [0, 0], sizes = [8, 1], strides = [1, 1]} : vector<8x256xf32> to vector<8x1xf32>
    %323 = tpu.concatenate %321, %322 in 1 : vector<8x255xf32>, vector<8x1xf32> -> vector<8x256xf32>
    %324 = vector.extract_strided_slice %0 {offsets = [5, 0], sizes = [1, 256], strides = [1, 1]} : vector<9x256xf32> to vector<1x256xf32>
    %325 = vector.broadcast %324 : vector<1x256xf32> to vector<8x256xf32>
    %326 = arith.mulf %323, %325 : vector<8x256xf32>
    %327 = vector.broadcast %320 : vector<8x1xf32> to vector<8x256xf32>
    %328 = arith.mulf %327, %326 : vector<8x256xf32>
    %329 = arith.addf %319, %328 : vector<8x256xf32>
    %330 = vector.extract_strided_slice %2 {offsets = [0, 6], sizes = [8, 1], strides = [1, 1]} : vector<8x9xf32> to vector<8x1xf32>
    %331 = vector.extract_strided_slice %269 {offsets = [0, 15], sizes = [8, 241], strides = [1, 1]} : vector<8x256xf32> to vector<8x241xf32>
    %332 = vector.extract_strided_slice %269 {offsets = [0, 0], sizes = [8, 15], strides = [1, 1]} : vector<8x256xf32> to vector<8x15xf32>
    %333 = tpu.concatenate %331, %332 in 1 : vector<8x241xf32>, vector<8x15xf32> -> vector<8x256xf32>
    %334 = vector.extract_strided_slice %0 {offsets = [6, 0], sizes = [1, 256], strides = [1, 1]} : vector<9x256xf32> to vector<1x256xf32>
    %335 = vector.broadcast %334 : vector<1x256xf32> to vector<8x256xf32>
    %336 = arith.mulf %333, %335 : vector<8x256xf32>
    %337 = vector.broadcast %330 : vector<8x1xf32> to vector<8x256xf32>
    %338 = arith.mulf %337, %336 : vector<8x256xf32>
    %339 = arith.addf %329, %338 : vector<8x256xf32>
    %340 = vector.extract_strided_slice %2 {offsets = [0, 7], sizes = [8, 1], strides = [1, 1]} : vector<8x9xf32> to vector<8x1xf32>
    %341 = vector.extract_strided_slice %269 {offsets = [0, 16], sizes = [8, 240], strides = [1, 1]} : vector<8x256xf32> to vector<8x240xf32>
    %342 = vector.extract_strided_slice %269 {offsets = [0, 0], sizes = [8, 16], strides = [1, 1]} : vector<8x256xf32> to vector<8x16xf32>
    %343 = tpu.concatenate %341, %342 in 1 : vector<8x240xf32>, vector<8x16xf32> -> vector<8x256xf32>
    %344 = vector.extract_strided_slice %0 {offsets = [7, 0], sizes = [1, 256], strides = [1, 1]} : vector<9x256xf32> to vector<1x256xf32>
    %345 = vector.broadcast %344 : vector<1x256xf32> to vector<8x256xf32>
    %346 = arith.mulf %343, %345 : vector<8x256xf32>
    %347 = vector.broadcast %340 : vector<8x1xf32> to vector<8x256xf32>
    %348 = arith.mulf %347, %346 : vector<8x256xf32>
    %349 = arith.addf %339, %348 : vector<8x256xf32>
    %350 = vector.extract_strided_slice %2 {offsets = [0, 8], sizes = [8, 1], strides = [1, 1]} : vector<8x9xf32> to vector<8x1xf32>
    %351 = vector.extract_strided_slice %269 {offsets = [0, 17], sizes = [8, 239], strides = [1, 1]} : vector<8x256xf32> to vector<8x239xf32>
    %352 = vector.extract_strided_slice %269 {offsets = [0, 0], sizes = [8, 17], strides = [1, 1]} : vector<8x256xf32> to vector<8x17xf32>
    %353 = tpu.concatenate %351, %352 in 1 : vector<8x239xf32>, vector<8x17xf32> -> vector<8x256xf32>
    %354 = vector.extract_strided_slice %0 {offsets = [8, 0], sizes = [1, 256], strides = [1, 1]} : vector<9x256xf32> to vector<1x256xf32>
    %355 = vector.broadcast %354 : vector<1x256xf32> to vector<8x256xf32>
    %356 = arith.mulf %353, %355 : vector<8x256xf32>
    %357 = vector.broadcast %350 : vector<8x1xf32> to vector<8x256xf32>
    %358 = arith.mulf %357, %356 : vector<8x256xf32>
    %359 = arith.addf %349, %358 : vector<8x256xf32>
    %360 = vector.shape_cast %359 : vector<8x256xf32> to vector<1x8x256xf32>
    %cst_62 = arith.constant dense<0.000000e+00> : vector<1xf32>
    %361 = vector.multi_reduction <add>, %360, %cst_62 [1, 2] : vector<1x8x256xf32> to vector<1xf32>
    %362 = vector.shape_cast %361 : vector<1xf32> to vector<1x1x1xf32>
    %363 = vector.extract %362[0, 0, 0] : f32 from vector<1x1x1xf32>
    %364 = vector.broadcast %363 : f32 to vector<1x1xf32>
    %cst_63 = arith.constant 2.048000e+03 : f32
    %365 = vector.broadcast %cst_63 : f32 to vector<1x1xf32>
    %366 = arith.divf %364, %365 : vector<1x1xf32>
    %367 = vector.broadcast %366 : vector<1x1xf32> to vector<8x256xf32>
    %368 = arith.subf %359, %367 : vector<8x256xf32>
    %369 = arith.mulf %368, %368 : vector<8x256xf32>
    %370 = vector.shape_cast %369 : vector<8x256xf32> to vector<1x8x256xf32>
    %cst_64 = arith.constant dense<0.000000e+00> : vector<1xf32>
    %371 = vector.multi_reduction <add>, %370, %cst_64 [1, 2] : vector<1x8x256xf32> to vector<1xf32>
    %372 = vector.shape_cast %371 : vector<1xf32> to vector<1x1x1xf32>
    %373 = vector.extract %372[0, 0, 0] : f32 from vector<1x1x1xf32>
    %374 = vector.broadcast %373 : f32 to vector<1x1xf32>
    %cst_65 = arith.constant 2.048000e+03 : f32
    %375 = vector.broadcast %cst_65 : f32 to vector<1x1xf32>
    %376 = arith.divf %374, %375 : vector<1x1xf32>
    %377 = vector.broadcast %366 : vector<1x1xf32> to vector<8x256xf32>
    %378 = arith.subf %359, %377 : vector<8x256xf32>
    %cst_66 = arith.constant 9.99999974E-6 : f32
    %379 = vector.broadcast %cst_66 : f32 to vector<1x1xf32>
    %380 = arith.addf %376, %379 : vector<1x1xf32>
    %381 = math.rsqrt %380 : vector<1x1xf32>
    %382 = vector.broadcast %381 : vector<1x1xf32> to vector<8x256xf32>
    %383 = arith.mulf %378, %382 : vector<8x256xf32>
    %384 = vector.broadcast %3 : vector<8x1xf32> to vector<8x256xf32>
    %385 = arith.mulf %383, %384 : vector<8x256xf32>
    %386 = vector.broadcast %4 : vector<8x1xf32> to vector<8x256xf32>
    %387 = arith.addf %385, %386 : vector<8x256xf32>
    %cst_67 = arith.constant dense<0.000000e+00> : vector<8x64xf32>
    %388 = tpu.matmul %387, %8, %cst_67 {dimension_numbers = #tpu.dot_dimension_numbers<[1], [0], [0], [1], [0, 0, 1, 1], [], []>} : vector<8x256xf32>, vector<256x64xf32>, vector<8x64xf32> -> vector<8x64xf32>
    %cst_68 = arith.constant dense<0.000000e+00> : vector<8x4xf32>
    %389 = tpu.matmul %388, %273, %cst_68 {dimension_numbers = #tpu.dot_dimension_numbers<[1], [0], [0], [1], [0, 0, 1, 1], [], []>} : vector<8x64xf32>, vector<64x4xf32>, vector<8x4xf32> -> vector<8x4xf32>
    %cst_69 = arith.constant dense<0xFF800000> : vector<8xf32>
    %390 = vector.multi_reduction <maximumf>, %389, %cst_69 [1] : vector<8x4xf32> to vector<8xf32>
    %391 = vector.shape_cast %390 : vector<8xf32> to vector<8x1xf32>
    %392 = vector.broadcast %391 : vector<8x1xf32> to vector<8x4xf32>
    %393 = arith.subf %389, %392 : vector<8x4xf32>
    %394 = math.exp %393 : vector<8x4xf32>
    %cst_70 = arith.constant dense<0.000000e+00> : vector<8xf32>
    %395 = vector.multi_reduction <add>, %394, %cst_70 [1] : vector<8x4xf32> to vector<8xf32>
    %396 = vector.shape_cast %395 : vector<8xf32> to vector<8x1xf32>
    %397 = tpu.reciprocal %396 {approx = true} : vector<8x1xf32> -> vector<8x1xf32>
    %398 = vector.broadcast %397 : vector<8x1xf32> to vector<8x4xf32>
    %399 = arith.mulf %394, %398 : vector<8x4xf32>
    %cst_71 = arith.constant dense<0.000000e+00> : vector<4x256xf32>
    %400 = tpu.matmul %271, %9, %cst_71 {dimension_numbers = #tpu.dot_dimension_numbers<[1], [0], [0], [1], [0, 0, 1, 1], [], []>} : vector<4x64xf32>, vector<64x256xf32>, vector<4x256xf32> -> vector<4x256xf32>
    %cst_72 = arith.constant dense<0.000000e+00> : vector<8x256xf32>
    %401 = tpu.matmul %399, %400, %cst_72 {dimension_numbers = #tpu.dot_dimension_numbers<[1], [0], [0], [1], [0, 0, 1, 1], [], []>} : vector<8x4xf32>, vector<4x256xf32>, vector<8x256xf32> -> vector<8x256xf32>
    %402 = vector.broadcast %10 : vector<1x256xf32> to vector<8x256xf32>
    %403 = arith.addf %401, %402 : vector<8x256xf32>
    %cst_73 = arith.constant 5.000000e-01 : f32
    %404 = vector.broadcast %cst_73 : f32 to vector<8x256xf32>
    %405 = arith.mulf %404, %403 : vector<8x256xf32>
    %cst_74 = arith.constant 0.707106769 : f32
    %406 = vector.broadcast %cst_74 : f32 to vector<8x256xf32>
    %407 = arith.mulf %403, %406 : vector<8x256xf32>
    %cst_75 = arith.constant 0.000000e+00 : f32
    %408 = vector.broadcast %cst_75 : f32 to vector<8x256xf32>
    %409 = arith.cmpf oge, %407, %408 : vector<8x256xf32>
    %cst_76 = arith.constant 1.000000e+00 : f32
    %cst_77 = arith.constant -1.000000e+00 : f32
    %410 = vector.broadcast %cst_76 : f32 to vector<8x256xf32>
    %411 = vector.broadcast %cst_77 : f32 to vector<8x256xf32>
    %412 = arith.select %409, %410, %411 : vector<8x256xi1>, vector<8x256xf32>
    %413 = math.absf %407 : vector<8x256xf32>
    %cst_78 = arith.constant 0.327591091 : f32
    %414 = vector.broadcast %cst_78 : f32 to vector<8x256xf32>
    %415 = arith.mulf %414, %413 : vector<8x256xf32>
    %cst_79 = arith.constant 1.000000e+00 : f32
    %416 = vector.broadcast %cst_79 : f32 to vector<8x256xf32>
    %417 = arith.addf %416, %415 : vector<8x256xf32>
    %cst_80 = arith.constant 1.000000e+00 : f32
    %418 = vector.broadcast %cst_80 : f32 to vector<8x256xf32>
    %419 = arith.divf %418, %417 : vector<8x256xf32>
    %cst_81 = arith.constant 1.06140542 : f32
    %420 = vector.broadcast %cst_81 : f32 to vector<8x256xf32>
    %421 = arith.mulf %420, %419 : vector<8x256xf32>
    %cst_82 = arith.constant -1.45315206 : f32
    %422 = vector.broadcast %cst_82 : f32 to vector<8x256xf32>
    %423 = arith.addf %421, %422 : vector<8x256xf32>
    %424 = arith.mulf %423, %419 : vector<8x256xf32>
    %cst_83 = arith.constant 1.42141378 : f32
    %425 = vector.broadcast %cst_83 : f32 to vector<8x256xf32>
    %426 = arith.addf %424, %425 : vector<8x256xf32>
    %427 = arith.mulf %426, %419 : vector<8x256xf32>
    %cst_84 = arith.constant -0.284496725 : f32
    %428 = vector.broadcast %cst_84 : f32 to vector<8x256xf32>
    %429 = arith.addf %427, %428 : vector<8x256xf32>
    %430 = arith.mulf %429, %419 : vector<8x256xf32>
    %cst_85 = arith.constant 0.254829586 : f32
    %431 = vector.broadcast %cst_85 : f32 to vector<8x256xf32>
    %432 = arith.addf %430, %431 : vector<8x256xf32>
    %433 = arith.mulf %432, %419 : vector<8x256xf32>
    %cst_86 = arith.constant 0.000000e+00 : f32
    %434 = vector.broadcast %cst_86 : f32 to vector<8x256xf32>
    %435 = arith.subf %434, %413 : vector<8x256xf32>
    %436 = arith.mulf %435, %413 : vector<8x256xf32>
    %437 = math.exp %436 : vector<8x256xf32>
    %438 = arith.mulf %433, %437 : vector<8x256xf32>
    %cst_87 = arith.constant 1.000000e+00 : f32
    %439 = vector.broadcast %cst_87 : f32 to vector<8x256xf32>
    %440 = arith.subf %439, %438 : vector<8x256xf32>
    %441 = arith.mulf %412, %440 : vector<8x256xf32>
    %cst_88 = arith.constant 1.000000e+00 : f32
    %442 = vector.broadcast %cst_88 : f32 to vector<8x256xf32>
    %443 = arith.addf %442, %441 : vector<8x256xf32>
    %444 = arith.mulf %405, %443 : vector<8x256xf32>
    %445 = vector.extract_strided_slice %444 {offsets = [0, 239], sizes = [8, 17], strides = [1, 1]} : vector<8x256xf32> to vector<8x17xf32>
    %446 = vector.extract_strided_slice %444 {offsets = [0, 0], sizes = [8, 239], strides = [1, 1]} : vector<8x256xf32> to vector<8x239xf32>
    %447 = tpu.concatenate %445, %446 in 1 : vector<8x17xf32>, vector<8x239xf32> -> vector<8x256xf32>
    %448 = vector.extract_strided_slice %0 {offsets = [0, 0], sizes = [1, 256], strides = [1, 1]} : vector<9x256xf32> to vector<1x256xf32>
    %449 = vector.broadcast %448 : vector<1x256xf32> to vector<8x256xf32>
    %450 = arith.mulf %447, %449 : vector<8x256xf32>
    %451 = vector.extract_strided_slice %444 {offsets = [0, 240], sizes = [8, 16], strides = [1, 1]} : vector<8x256xf32> to vector<8x16xf32>
    %452 = vector.extract_strided_slice %444 {offsets = [0, 0], sizes = [8, 240], strides = [1, 1]} : vector<8x256xf32> to vector<8x240xf32>
    %453 = tpu.concatenate %451, %452 in 1 : vector<8x16xf32>, vector<8x240xf32> -> vector<8x256xf32>
    %454 = vector.extract_strided_slice %0 {offsets = [1, 0], sizes = [1, 256], strides = [1, 1]} : vector<9x256xf32> to vector<1x256xf32>
    %455 = vector.broadcast %454 : vector<1x256xf32> to vector<8x256xf32>
    %456 = arith.mulf %453, %455 : vector<8x256xf32>
    %457 = vector.extract_strided_slice %444 {offsets = [0, 241], sizes = [8, 15], strides = [1, 1]} : vector<8x256xf32> to vector<8x15xf32>
    %458 = vector.extract_strided_slice %444 {offsets = [0, 0], sizes = [8, 241], strides = [1, 1]} : vector<8x256xf32> to vector<8x241xf32>
    %459 = tpu.concatenate %457, %458 in 1 : vector<8x15xf32>, vector<8x241xf32> -> vector<8x256xf32>
    %460 = vector.extract_strided_slice %0 {offsets = [2, 0], sizes = [1, 256], strides = [1, 1]} : vector<9x256xf32> to vector<1x256xf32>
    %461 = vector.broadcast %460 : vector<1x256xf32> to vector<8x256xf32>
    %462 = arith.mulf %459, %461 : vector<8x256xf32>
    %463 = vector.extract_strided_slice %444 {offsets = [0, 255], sizes = [8, 1], strides = [1, 1]} : vector<8x256xf32> to vector<8x1xf32>
    %464 = vector.extract_strided_slice %444 {offsets = [0, 0], sizes = [8, 255], strides = [1, 1]} : vector<8x256xf32> to vector<8x255xf32>
    %465 = tpu.concatenate %463, %464 in 1 : vector<8x1xf32>, vector<8x255xf32> -> vector<8x256xf32>
    %466 = vector.extract_strided_slice %0 {offsets = [3, 0], sizes = [1, 256], strides = [1, 1]} : vector<9x256xf32> to vector<1x256xf32>
    %467 = vector.broadcast %466 : vector<1x256xf32> to vector<8x256xf32>
    %468 = arith.mulf %465, %467 : vector<8x256xf32>
    %469 = vector.extract_strided_slice %0 {offsets = [4, 0], sizes = [1, 256], strides = [1, 1]} : vector<9x256xf32> to vector<1x256xf32>
    %470 = vector.broadcast %469 : vector<1x256xf32> to vector<8x256xf32>
    %471 = arith.mulf %444, %470 : vector<8x256xf32>
    %472 = vector.extract_strided_slice %444 {offsets = [0, 1], sizes = [8, 255], strides = [1, 1]} : vector<8x256xf32> to vector<8x255xf32>
    %473 = vector.extract_strided_slice %444 {offsets = [0, 0], sizes = [8, 1], strides = [1, 1]} : vector<8x256xf32> to vector<8x1xf32>
    %474 = tpu.concatenate %472, %473 in 1 : vector<8x255xf32>, vector<8x1xf32> -> vector<8x256xf32>
    %475 = vector.extract_strided_slice %0 {offsets = [5, 0], sizes = [1, 256], strides = [1, 1]} : vector<9x256xf32> to vector<1x256xf32>
    %476 = vector.broadcast %475 : vector<1x256xf32> to vector<8x256xf32>
    %477 = arith.mulf %474, %476 : vector<8x256xf32>
    %478 = vector.extract_strided_slice %444 {offsets = [0, 15], sizes = [8, 241], strides = [1, 1]} : vector<8x256xf32> to vector<8x241xf32>
    %479 = vector.extract_strided_slice %444 {offsets = [0, 0], sizes = [8, 15], strides = [1, 1]} : vector<8x256xf32> to vector<8x15xf32>
    %480 = tpu.concatenate %478, %479 in 1 : vector<8x241xf32>, vector<8x15xf32> -> vector<8x256xf32>
    %481 = vector.extract_strided_slice %0 {offsets = [6, 0], sizes = [1, 256], strides = [1, 1]} : vector<9x256xf32> to vector<1x256xf32>
    %482 = vector.broadcast %481 : vector<1x256xf32> to vector<8x256xf32>
    %483 = arith.mulf %480, %482 : vector<8x256xf32>
    %484 = vector.extract_strided_slice %444 {offsets = [0, 16], sizes = [8, 240], strides = [1, 1]} : vector<8x256xf32> to vector<8x240xf32>
    %485 = vector.extract_strided_slice %444 {offsets = [0, 0], sizes = [8, 16], strides = [1, 1]} : vector<8x256xf32> to vector<8x16xf32>
    %486 = tpu.concatenate %484, %485 in 1 : vector<8x240xf32>, vector<8x16xf32> -> vector<8x256xf32>
    %487 = vector.extract_strided_slice %0 {offsets = [7, 0], sizes = [1, 256], strides = [1, 1]} : vector<9x256xf32> to vector<1x256xf32>
    %488 = vector.broadcast %487 : vector<1x256xf32> to vector<8x256xf32>
    %489 = arith.mulf %486, %488 : vector<8x256xf32>
    %490 = vector.extract_strided_slice %444 {offsets = [0, 17], sizes = [8, 239], strides = [1, 1]} : vector<8x256xf32> to vector<8x239xf32>
    %491 = vector.extract_strided_slice %444 {offsets = [0, 0], sizes = [8, 17], strides = [1, 1]} : vector<8x256xf32> to vector<8x17xf32>
    %492 = tpu.concatenate %490, %491 in 1 : vector<8x239xf32>, vector<8x17xf32> -> vector<8x256xf32>
    %493 = vector.extract_strided_slice %0 {offsets = [8, 0], sizes = [1, 256], strides = [1, 1]} : vector<9x256xf32> to vector<1x256xf32>
    %494 = vector.broadcast %493 : vector<1x256xf32> to vector<8x256xf32>
    %495 = arith.mulf %492, %494 : vector<8x256xf32>
    %496 = tpu.concatenate %450, %456, %462, %468, %471, %477, %483, %489, %495 in 0 : vector<8x256xf32>, vector<8x256xf32>, vector<8x256xf32>, vector<8x256xf32>, vector<8x256xf32>, vector<8x256xf32>, vector<8x256xf32>, vector<8x256xf32>, vector<8x256xf32> -> vector<72x256xf32>
    %cst_89 = arith.constant dense<0.000000e+00> : vector<8x256xf32>
    %497 = tpu.matmul %11, %496, %cst_89 {dimension_numbers = #tpu.dot_dimension_numbers<[1], [0], [0], [1], [0, 0, 1, 1], [], []>} : vector<8x72xf32>, vector<72x256xf32>, vector<8x256xf32> -> vector<8x256xf32>
    %498 = arith.mulf %497, %497 : vector<8x256xf32>
    %cst_90 = arith.constant dense<0.000000e+00> : vector<8xf32>
    %499 = vector.multi_reduction <add>, %498, %cst_90 [1] : vector<8x256xf32> to vector<8xf32>
    %500 = vector.shape_cast %499 : vector<8xf32> to vector<8x1xf32>
    %501 = math.sqrt %500 : vector<8x1xf32>
    %cst_91 = arith.constant dense<0.000000e+00> : vector<1xf32>
    %502 = vector.multi_reduction <add>, %501, %cst_91 [0] : vector<8x1xf32> to vector<1xf32>
    %503 = vector.shape_cast %502 : vector<1xf32> to vector<1x1xf32>
    %cst_92 = arith.constant 8.000000e+00 : f32
    %504 = vector.broadcast %cst_92 : f32 to vector<1x1xf32>
    %505 = arith.divf %503, %504 : vector<1x1xf32>
    %cst_93 = arith.constant 9.99999997E-7 : f32
    %506 = vector.broadcast %cst_93 : f32 to vector<1x1xf32>
    %507 = arith.addf %505, %506 : vector<1x1xf32>
    %508 = tpu.reciprocal %507 {approx = true} : vector<1x1xf32> -> vector<1x1xf32>
    %509 = vector.broadcast %508 : vector<1x1xf32> to vector<8x1xf32>
    %510 = arith.mulf %501, %509 : vector<8x1xf32>
    %511 = vector.broadcast %510 : vector<8x1xf32> to vector<8x256xf32>
    %512 = arith.mulf %497, %511 : vector<8x256xf32>
    %513 = vector.broadcast %5 : vector<8x1xf32> to vector<8x256xf32>
    %514 = arith.mulf %513, %512 : vector<8x256xf32>
    %515 = vector.broadcast %6 : vector<8x1xf32> to vector<8x256xf32>
    %516 = arith.addf %514, %515 : vector<8x256xf32>
    %517 = arith.addf %516, %497 : vector<8x256xf32>
    %518 = vector.broadcast %7 : vector<8x1xf32> to vector<8x256xf32>
    %519 = arith.mulf %517, %518 : vector<8x256xf32>
    %520 = arith.addf %519, %269 : vector<8x256xf32>
    %c1_94 = arith.constant 1 : index
    %c0_95 = arith.constant 0 : index
    %c0_96 = arith.constant 0 : index
    %521 = vector.load %arg10[%c1_94, %c0_95, %c0_96] : memref<2x8x256xf32, #tpu.memory_space<vmem>>, vector<1x8x256xf32>
    %522 = vector.shape_cast %521 : vector<1x8x256xf32> to vector<8x256xf32>
    %523 = vector.shape_cast %520 : vector<8x256xf32> to vector<1x8x256xf32>
    tpu.vector_store %arg10[%c1_94, %c0_95, %c0_96], %523 {strides = array<i32>} : memref<2x8x256xf32, #tpu.memory_space<vmem>>, vector<1x8x256xf32>,
    return
  }
  func.func @transform_0(%arg0: i32) -> (i32, i32, i32) {
    %c0_i32 = arith.constant 0 : i32
    %c0_i32_0 = arith.constant 0 : i32
    %c0_i32_1 = arith.constant 0 : i32
    return %arg0, %c0_i32, %c0_i32_0 : i32, i32, i32
  }
  func.func @transform_1(%arg0: i32) -> (i32, i32, i32) {
    %c0_i32 = arith.constant 0 : i32
    %c0_i32_0 = arith.constant 0 : i32
    %c0_i32_1 = arith.constant 0 : i32
    return %arg0, %c0_i32, %c0_i32_0 : i32, i32, i32
  }
  func.func @transform_2(%arg0: i32) -> (i32, i32, i32) {
    %c0_i32 = arith.constant 0 : i32
    %c0_i32_0 = arith.constant 0 : i32
    %c0_i32_1 = arith.constant 0 : i32
    return %arg0, %c0_i32, %c0_i32_0 : i32, i32, i32
  }
  func.func @transform_3(%arg0: i32) -> (i32, i32) {
    %c0_i32 = arith.constant 0 : i32
    %c0_i32_0 = arith.constant 0 : i32
    %c0_i32_1 = arith.constant 0 : i32
    return %c0_i32, %c0_i32_0 : i32, i32
  }
  func.func @transform_4(%arg0: i32) -> (i32, i32) {
    %c0_i32 = arith.constant 0 : i32
    %c0_i32_0 = arith.constant 0 : i32
    %c0_i32_1 = arith.constant 0 : i32
    return %c0_i32, %c0_i32_0 : i32, i32
  }
  func.func @transform_5(%arg0: i32) -> (i32, i32) {
    %c0_i32 = arith.constant 0 : i32
    %c0_i32_0 = arith.constant 0 : i32
    %c0_i32_1 = arith.constant 0 : i32
    return %c0_i32, %c0_i32_0 : i32, i32
  }
  func.func @transform_6(%arg0: i32) -> (i32, i32) {
    %c0_i32 = arith.constant 0 : i32
    %c0_i32_0 = arith.constant 0 : i32
    %c0_i32_1 = arith.constant 0 : i32
    return %c0_i32, %c0_i32_0 : i32, i32
  }
  func.func @transform_7(%arg0: i32) -> (i32, i32) {
    %c0_i32 = arith.constant 0 : i32
    %c0_i32_0 = arith.constant 0 : i32
    %c0_i32_1 = arith.constant 0 : i32
    return %c0_i32, %c0_i32_0 : i32, i32
  }
  func.func @transform_8(%arg0: i32) -> (i32, i32) {
    %c0_i32 = arith.constant 0 : i32
    %c0_i32_0 = arith.constant 0 : i32
    %c0_i32_1 = arith.constant 0 : i32
    return %c0_i32, %c0_i32_0 : i32, i32
  }
  func.func @transform_9(%arg0: i32) -> (i32, i32, i32) {
    %c0_i32 = arith.constant 0 : i32
    %c0_i32_0 = arith.constant 0 : i32
    %c0_i32_1 = arith.constant 0 : i32
    return %arg0, %c0_i32, %c0_i32_0 : i32, i32, i32
  }
}

</mosaic_0001>

<bundles_post_ra>
// kernel: forward.1
= control target key start
LH: loop header
LB: loop body
LE: loop exit
PB: predicated region body
PF: predicated region fallthrough
CT: control target
= control target key end

     0   :  { %v1534_v1 = vmov 1   ;;  %v1535_v2 = vmov 0   ;;  %s1536_s11 = smov 15   ;;  %s1537_s12 = smov 16   ;;  %v1539_v3 = vmov 2   ;;  %v1541_v6 = vmov 3   ;;  %s2539_s0 = inlined_call_operand.vmem [shape: f32[2,8,256], index: 0, kind: input, shape index: {}]   ;;  %s2540_s3 = inlined_call_operand.vmem [shape: f32[9,256], index: 3, kind: input, shape index: {}]   ;;  %s2541_s4 = inlined_call_operand.vmem [shape: f32[8,16], index: 4, kind: input, shape index: {}]   ;;  %s2542_s5 = inlined_call_operand.vmem [shape: f32[256,64], index: 5, kind: input, shape index: {}]   ;;  %s2543_s2 = inlined_call_operand.vmem [shape: f32[2,64,4], index: 2, kind: input, shape index: {}]   ;;  %s2544_s6 = inlined_call_operand.vmem [shape: f32[64,256], index: 6, kind: input, shape index: {}]   ;;  %s2545_s1 = inlined_call_operand.vmem [shape: f32[2,4,64], index: 1, kind: input, shape index: {}]   ;;  %s2546_s7 = inlined_call_operand.vmem [shape: f32[1,256], index: 7, kind: input, shape index: {}]   ;;  %s2547_s8 = inlined_call_operand.vmem [shape: f32[8,72], index: 8, kind: input, shape index: {}]   ;;  %s2548_s9 = inlined_call_operand.vmem [shape: f32[2,8,256], index: 9, kind: output, shape index: {}]  }
   0x1   :  { %v1612_v0 = vld [vmem:[%s2539_s0 + $0x8] sm:$0xff]  ;;  %1471 = vset.pattern.permute.xlu1 %v1534_v1  ;;  %1470 = vset.pattern.permute.xlu0 %v1535_v2  ;;  %s1538_s13 = smov 17   ;;  %v1623_v4 = vld [vmem:[%s2539_s0] sm:$0xff]  ;;  %s1540_s18 = smov 1   ;;  %v1542_v7 = vmov 4   ;;  %v1544_v8 = vmov 8  }
   0x2   :  { %143 = vrot.lane.b32.xlu2 %v1612_v0, %s1536_s11  ;;  %121 = vrot.lane.b32.xlu1 %v1612_v0, %s1537_s12  ;;  %v36_v5 = vld [vmem:[%s2541_s4] sm:$0xff]  ;;  %s1543_s19 = smov 127   ;;  %s1545_s20 = smov 113   ;;  %v1547_v9 = vmov 5   ;;  %v1549_v10 = vmov 6   ;;  %v1550_v11 = vmov 7  }
   0x3   :  { %99 = vrot.lane.b32.xlu0 %v1612_v0, %s1538_s13  ;;  %1472 = vset.pattern.permute.xlu2 %v1539_v3  ;;  %s1546_s21 = smov 112   ;;  %s1548_s22 = smov 111   ;;  %v1551_v12 = vmov 9   ;;  %v1552_v13 = vmov 10   ;;  %v1657_v14 = vld [vmem:[%s2539_s0 + $0x18] sm:$0xff]  ;;  %v1664_v15 = vld [vmem:[%s2539_s0 + $0x10] sm:$0xff] }
   0x4   :  { %vm105_vm0 = vcmask 138240   ;;  %v32_v33 = vld [vmem:[%s2540_s3] sm:$0xff]  ;;  %v33_v34 = vld [vmem:[%s2540_s3 + $0x8] sm:$0xff]  ;;  %vm148_vm1 = vcmask 121856   ;;  %vm126_vm2 = vcmask 130048   ;;  %vm170_vm3 = vcmask 7168  }
   0x5   :  { %v1700_v35 = vperm.slane %v32_v33, 0  ;;  %v1702_v36 = vperm.slane %v33_v34, 0  ;;  %v1706_v39 = vperm.slane %v32_v33, 2  ;;  %v1708_v40 = vperm.slane %v32_v33, 1 }
   0x6   :  { %v1710_v41 = vperm.slane %v33_v34, 1  ;;  %v1712_v42 = vperm.slane %v33_v34, 2  ;;  %v1722_v51 = vperm.slane %v32_v33, 3  ;;  %v1724_v52 = vperm.slane %v33_v34, 3 }
   0x7   :  { %2561 = vst [vmem:[#allocation2_spill] sm:$0xff] %v1700_v35  ;;  %v1736_v1 = vperm.slane %v32_v33, 4  ;;  %v1738_v2 = vperm.slane %v33_v34, 4  ;;  %vm203_vm4 = vcmask 1039360   ;;  %vm225_vm5 = vcmask 924672  }
   0x8   :  { %2562 = vst [vmem:[#allocation3_spill] sm:$0xff] %v1702_v36  ;;  %vm247_vm6 = vcmask 916480   ;;  %vm269_vm7 = vcmask 908288   ;;  %vm387_vm12 = vcmask 523264   ;;  %vm2560_vm13 = vcmask 31744  }
   0x9   :  { %2563 = vst [vmem:[#allocation4_spill] sm:$0xff] %v1708_v40 }
   0xa   :  { %146 = vrot.lane.b32.xlu2 %v1623_v4, %s1536_s11  ;;  %124 = vrot.lane.b32.xlu1 %v1623_v4, %s1537_s12  ;;  %2564 = vst [vmem:[#allocation5_spill] sm:$0xff] %v1710_v41 }
   0xb   :  { %103 = vrot.lane.b32.xlu0 %v1623_v4, %s1538_s13  ;;  %2565 = vst [vmem:[#allocation6_spill] sm:$0xff] %v1712_v42 }
  0x12   :  { %165 = vrot.lane.b32.xlu2 %v1612_v0, %s1540_s18  ;;  %136 = vperm.xlu1 %1471, %v36_v5  }
  0x13   :  { %116 = vperm.xlu0 %1470, %v36_v5  }
  0x1a   :  { %158 = vperm.xlu2 %1472, %v36_v5   ;;  %168 = vrot.lane.b32.xlu1 %v1623_v4, %s1540_s18 }
  0x1b   :  { %1473 = vset.pattern.permute.xlu0 %v1541_v6  ;;  %1474 = vset.pattern.permute.xlu1 %v1542_v7  ;;  %v1743_v7 = vperm.slane %v32_v33, 5 }
  0x1c   :  { %180 = vperm.xlu0 %1473, %v36_v5  }
  0x22   :  { %201 = vrot.lane.b32.xlu2 %v1612_v0, %s1543_s19  ;;  %199 = vrot.lane.b32.xlu1 %v1623_v4, %s1543_s19 }
  0x23   :  { %1478 = vset.pattern.permute.xlu2 %v1544_v8  ;;  %v1745_v8 = vperm.slane %v33_v34, 5 }
  0x24   :  { %223 = vrot.lane.b32.xlu0 %v1612_v0, %s1545_s20 }
  0x2a   :  { %221 = vrot.lane.b32.xlu2 %v1623_v4, %s1545_s20  ;;  %192 = vperm.xlu1 %1474, %v36_v5  }
  0x2c   :  { %245 = vrot.lane.b32.xlu0 %v1612_v0, %s1546_s21 }
  0x32   :  { %243 = vrot.lane.b32.xlu2 %v1623_v4, %s1546_s21  ;;  %1475 = vset.pattern.permute.xlu1 %v1547_v9 }
  0x33   :  { %214 = vperm.xlu1 %1475, %v36_v5  }
  0x34   :  { %267 = vrot.lane.b32.xlu0 %v1612_v0, %s1548_s22 }
  0x3a   :  { %265 = vrot.lane.b32.xlu2 %v1623_v4, %s1548_s22 }
  0x3b   :  { %1476 = vset.pattern.permute.xlu1 %v1549_v10 }
  0x3c   :  { %236 = vperm.xlu1 %1476, %v36_v5  }
  0x42   :  { %280 = vperm.xlu2 %1478, %v36_v5  }
  0x44   :  { %1477 = vset.pattern.permute.xlu1 %v1550_v11 }
  0x45   :  { %258 = vperm.xlu1 %1477, %v36_v5  }
  0x4a   :  { %1479 = vset.pattern.permute.xlu2 %v1551_v12  ;;  %v190_v12 = vmul.f32 %v1738_v2, %v1612_v0 }
  0x4b   :  { %336 = vperm.xlu2 %1479, %v36_v5  }
  0x53   :  { %1480 = vset.pattern.permute.xlu2 %v1552_v13  ;;  %v189_v13 = vmul.f32 %v1736_v1, %v1623_v4  ;;  %v1764_v4 = vperm.slane %v32_v33, 7 }
  0x54   :  { %342 = vperm.xlu2 %1480, %v36_v5  }
  0x5c   :  { %812 = vrot.lane.b32.xlu2 %v1657_v14, %s1538_s13  ;;  %v144_v16 = vpop.permute.xlu2 %143 }
  0x64   :  { %816 = vrot.lane.b32.xlu2 %v1664_v15, %s1538_s13  ;;  %v147_v17 = vpop.permute.xlu2 %146 }
  0x65   :  { %v149_v43 = vsel %vm148_vm1, %v147_v17, %v144_v16  ;;  %v152_v46 = vsel %vm148_vm1, %v144_v16, %v147_v17  ;;  %v1752_v16 = vperm.slane %v32_v33, 6  ;;  %v1754_v17 = vperm.slane %v33_v34, 6 }
  0x66   :  { %v155_v55 = vmul.f32 %v1706_v39, %v152_v46  ;;  %v156_v56 = vmul.f32 %v1712_v42, %v149_v43 }
  0x6c   :  { %826 = vrot.lane.b32.xlu2 %v1657_v14, %s1537_s12  ;;  %v166_v21 = vpop.permute.xlu2 %165 }
  0x74   :  { %v122_v18 = vpop.permute.xlu1 %121  ;;  %829 = vrot.lane.b32.xlu2 %v1664_v15, %s1537_s12  ;;  %v1678_v24 = vpop.permute.xlu2 %158 }
  0x75   :  { %v100_v19 = vpop.permute.xlu0 %99  ;;  %v161_v6 = vmul.f32 %v1678_v24, %v155_v55  ;;  %v162_v9 = vmul.f32 %v1678_v24, %v156_v56  ;;  %v1783_v56 = vld [vmem:[%s2540_s3 + $0x10] ss:$0 sm:$0xff] }
  0x7c   :  { %856 = vrot.lane.b32.xlu2 %v1657_v14, %s1540_s18  ;;  %v125_v20 = vpop.permute.xlu1 %124  ;;  %v1684_v27 = vpop.permute.xlu2 %201 }
  0x7d   :  { %v104_v22 = vpop.permute.xlu0 %103  ;;  %v127_v44 = vsel %vm126_vm2, %v125_v20, %v122_v18  ;;  %v130_v45 = vsel %vm126_vm2, %v122_v18, %v125_v20 }
  0x7e   :  { %v106_v37 = vsel %vm105_vm0, %v104_v22, %v100_v19  ;;  %v109_v38 = vsel %vm105_vm0, %v100_v19, %v104_v22  ;;  %v133_v49 = vmul.f32 %v1708_v40, %v130_v45  ;;  %v134_v50 = vmul.f32 %v1710_v41, %v127_v44 }
  0x7f   :  { %v112_v47 = vmul.f32 %v1700_v35, %v109_v38  ;;  %v113_v48 = vmul.f32 %v1702_v36, %v106_v37  ;;  %v1768_v44 = vperm.slane %v33_v34, 7 }
  0x84   :  { %859 = vrot.lane.b32.xlu2 %v1664_v15, %s1540_s18  ;;  %v1676_v23 = vpop.permute.xlu1 %136  ;;  %v222_v30 = vpop.permute.xlu2 %221 }
  0x85   :  { %v1680_v25 = vpop.permute.xlu0 %116  ;;  %v139_v60 = vmul.f32 %v1676_v23, %v133_v49  ;;  %v140_v61 = vmul.f32 %v1676_v23, %v134_v50 }
  0x86   :  { %v119_v62 = vmul.f32 %v1680_v25, %v112_v47  ;;  %v120_v63 = vmul.f32 %v1680_v25, %v113_v48 }
  0x88   :  { %v141_v10 = vadd.f32 %v139_v60, %v119_v62  ;;  %v142_v11 = vadd.f32 %v140_v61, %v120_v63 }
  0x8a   :  { %v163_v37 = vadd.f32 %v161_v6, %v141_v10  ;;  %v164_v38 = vadd.f32 %v162_v9, %v142_v11 }
  0x8c   :  { %v169_v26 = vpop.permute.xlu1 %168  ;;  %879 = vrot.lane.b32.xlu2 %v1657_v14, %s1543_s19  ;;  %v244_v53 = vpop.permute.xlu2 %243 }
  0x8d   :  { %v171_v57 = vsel %vm170_vm3, %v169_v26, %v166_v21  ;;  %v174_v58 = vsel %vm170_vm3, %v166_v21, %v169_v26 }
  0x8e   :  { %v1686_v28 = vpop.permute.xlu0 %180  ;;  %v177_v3 = vmul.f32 %v1722_v51, %v174_v58  ;;  %v178_v5 = vmul.f32 %v1724_v52, %v171_v57  ;;  %v1788_v57 = vld [vmem:[%s2540_s3 + $0x18] ss:$0 sm:$0xff] }
  0x90   :  { %v183_v18 = vmul.f32 %v1686_v28, %v177_v3  ;;  %v184_v19 = vmul.f32 %v1686_v28, %v178_v5 }
  0x92   :  { %v186_v33 = vadd.f32 %v184_v19, %v164_v38 }
  0x94   :  { %v200_v29 = vpop.permute.xlu1 %199  ;;  %907 = vrot.lane.b32.xlu2 %v1664_v15, %s1546_s21  ;;  %v266_v43 = vpop.permute.xlu2 %265 }
  0x95   :  { %v204_v20 = vsel %vm203_vm4, %v200_v29, %v1684_v27  ;;  %v208_v21 = vsel %vm203_vm4, %v1684_v27, %v200_v29 }
  0x96   :  { %v224_v32 = vpop.permute.xlu0 %223  ;;  %v211_v45 = vmul.f32 %v1743_v7, %v204_v20  ;;  %v212_v46 = vmul.f32 %v1745_v8, %v208_v21 }
  0x97   :  { %v226_v22 = vsel %vm225_vm5, %v222_v30, %v224_v32  ;;  %v230_v0 = vsel %vm225_vm5, %v224_v32, %v222_v30  ;;  %v185_v32 = vadd.f32 %v183_v18, %v163_v37 }
  0x98   :  { %v233_v47 = vmul.f32 %v1752_v16, %v226_v22  ;;  %v234_v48 = vmul.f32 %v1754_v17, %v230_v0 }
  0x9c   :  { %v1690_v31 = vpop.permute.xlu1 %192  ;;  %924 = vrot.lane.b32.xlu2 %v1657_v14, %s1548_s22  ;;  %v1802_v20 = vpop.permute.xlu2 %280 }
  0x9d   :  { %v195_v27 = vmul.f32 %v1690_v31, %v189_v13  ;;  %v196_v29 = vmul.f32 %v1690_v31, %v190_v12 }
  0x9e   :  { %v246_v59 = vpop.permute.xlu0 %245 }
  0x9f   :  { %v248_v50 = vsel %vm247_vm6, %v244_v53, %v246_v59  ;;  %v252_v55 = vsel %vm247_vm6, %v246_v59, %v244_v53  ;;  %v197_v61 = vadd.f32 %v195_v27, %v185_v32  ;;  %v198_v62 = vadd.f32 %v196_v29, %v186_v33 }
  0xa0   :  { %v255_v59 = vmul.f32 %v1764_v4, %v248_v50  ;;  %v256_v3 = vmul.f32 %v1768_v44, %v252_v55 }
  0xa5   :  { %v1726_v54 = vpop.permute.xlu1 %214 }
  0xa6   :  { %v268_v30 = vpop.permute.xlu0 %267  ;;  %v217_v49 = vmul.f32 %v1726_v54, %v211_v45  ;;  %v218_v34 = vmul.f32 %v1726_v54, %v212_v46 }
  0xa7   :  { %v270_v58 = vsel %vm269_vm7, %v266_v43, %v268_v30  ;;  %v274_v60 = vsel %vm269_vm7, %v268_v30, %v266_v43 }
  0xa8   :  { %v219_v5 = vadd.f32 %v217_v49, %v197_v61  ;;  %v220_v6 = vadd.f32 %v218_v34, %v198_v62  ;;  %v277_v9 = vmul.f32 %v1783_v56, %v270_v58  ;;  %v278_v10 = vmul.f32 %v1788_v57, %v274_v60 }
  0xaa   :  { %v283_v21 = vmul.f32 %v1802_v20, %v277_v9  ;;  %v284_v22 = vmul.f32 %v1802_v20, %v278_v10 }
  0xae   :  { %v1766_v26 = vpop.permute.xlu1 %236 }
  0xaf   :  { %v239_v63 = vmul.f32 %v1766_v26, %v233_v47  ;;  %v240_v53 = vmul.f32 %v1766_v26, %v234_v48  ;;  %v1553_v48 = vmov 2048.0  }
  0xb0   :  { %1487 = vrcp.f32 %v1553_v48 }
  0xb1   :  { %v241_v18 = vadd.f32 %v239_v63, %v219_v5  ;;  %v242_v19 = vadd.f32 %v240_v53, %v220_v6  ;;  %v1831_v6 = vpop.permute.xlu2 %336 }
  0xb6   :  { %v1488_v49 = vpop.eup %1487 }
  0xb7   :  { %v1798_v11 = vpop.permute.xlu1 %258  ;;  %v299_v34 = vmul.f32 2048.0, %v1488_v49  ;;  %vm303_vm8 = vweird.f32 %v1488_v49 }
  0xb8   :  { %v261_v12 = vmul.f32 %v1798_v11, %v255_v59  ;;  %v262_v13 = vmul.f32 %v1798_v11, %v256_v3 }
  0xb9   :  { %v300_v50 = vsub.f32 1.0, %v299_v34  ;;  %v1833_v9 = vpop.permute.xlu2 %342 }
  0xba   :  { %v263_v0 = vadd.f32 %v261_v12, %v241_v18  ;;  %v264_v37 = vadd.f32 %v262_v13, %v242_v19 }
  0xbb   :  { %v301_v55 = vmul.f32 %v1488_v49, %v300_v50  ;;  %v1844_v50 = vld [vmem:[%s2542_s5 + $0x78] sm:$0xff] }
  0xbc   :  { %v285_v38 = vadd.f32 %v283_v21, %v263_v0  ;;  %v286_v43 = vadd.f32 %v284_v22, %v264_v37  ;;  %347 = vmatpush.msra.mxu0 %v1844_v50 }
  0xbd   :  { %v302_v58 = vadd.f32 %v1488_v49, %v301_v55  ;;  %v1849_v55 = vld [vmem:[%s2542_s5 + $0xf8] sm:$0xff] }
  0xbe   :  { %v287_v45 = vadd.f32 %v286_v43, %v285_v38  ;;  %367 = vmatpush.msra.mxu1 %v1849_v55 }
  0xbf   :  { %v1814_v60 = vsel %vm303_vm8, %v1488_v49, %v302_v58 }
  0xc0   :  { %288 = vadd.xlane.f32.xlu0 %v287_v45 }
  0xc1   :  { %v813_v10 = vpop.permute.xlu2 %812 }
  0xc9   :  { %v817_v12 = vpop.permute.xlu2 %816 }
  0xca   :  { %v821_v48 = vsel %vm105_vm0, %v813_v10, %v817_v12 }
  0xcb   :  { %v822_v58 = vmul.f32 %v821_v48, %v1700_v35 }
  0xd1   :  { %v827_v13 = vpop.permute.xlu2 %826 }
  0xd4   :  { %841 = vrot.lane.b32.xlu0 %v1657_v14, %s1536_s11 }
  0xd9   :  { %v830_v18 = vpop.permute.xlu2 %829 }
  0xdc   :  { %877 = vrot.lane.b32.xlu0 %v1664_v15, %s1543_s19 }
  0xe1   :  { %v857_v19 = vpop.permute.xlu2 %856 }
  0xe4   :  { %894 = vrot.lane.b32.xlu0 %v1657_v14, %s1545_s20 }
  0xe9   :  { %v860_v45 = vpop.permute.xlu2 %859 }
  0xec   :  { %922 = vrot.lane.b32.xlu0 %v1664_v15, %s1548_s22 }
 0x133   :  { %v289_v46 = vpop.xlane.xlu0 %288 }
 0x134   :  { %v290_v27 = vrot.slane %v289_v46, 4 }
 0x136   :  { %v291_v29 = vadd.f32 %v290_v27, %v289_v46 }
 0x138   :  { %v292_v30 = vrot.slane %v291_v29, 2 }
 0x13a   :  { %v293_v32 = vadd.f32 %v292_v30, %v291_v29  ;;  %v880_v29 = vpop.permute.xlu2 %879 }
 0x13c   :  { %v294_v33 = vrot.slane %v293_v32, 1 }
 0x13e   :  { %v295_v47 = vadd.f32 %v294_v33, %v293_v32  ;;  %v831_v32 = vsel %vm126_vm2, %v830_v18, %v827_v13  ;;  %v834_v33 = vsel %vm126_vm2, %v827_v13, %v830_v18 }
 0x13f   :  { %v835_v49 = vmul.f32 %v834_v33, %v1708_v40  ;;  %v836_v34 = vmul.f32 %v831_v32, %v1710_v41 }
 0x140   :  { %1437 = vpush %v295_v47  ;;  %v818_v47 = vsel %vm105_vm0, %v817_v12, %v813_v10  ;;  %v824_v12 = vmul.f32 %v822_v58, %v1680_v25 }
 0x171   :  { %s1438_s17 = spop %1437 }
 0x172   :  { %v297_v61 = vstv %s1438_s17 }
 0x173   :  { %v305_v62 = vmul.f32 %v1814_v60, %v297_v61  ;;  %v823_v61 = vmul.f32 %v818_v47, %v1702_v36 }
 0x175   :  { %v1817_v63 = vsub.f32 %v285_v38, %v305_v62  ;;  %v1819_v53 = vsub.f32 %v286_v43, %v305_v62  ;;  %v842_v38 = vpop.permute.xlu0 %841  ;;  %v861_v62 = vsel %vm170_vm3, %v860_v45, %v857_v19  ;;  %v825_v13 = vmul.f32 %v823_v61, %v1680_v25 }
 0x176   :  { %v872_v25 = vmul.f32 %v1657_v14, %v1738_v2 }
 0x177   :  { %v308_v59 = vmul.f32 %v1817_v63, %v1817_v63  ;;  %v309_v3 = vmul.f32 %v1819_v53, %v1819_v53 }
 0x179   :  { %v310_v5 = vadd.f32 %v309_v3, %v308_v59  ;;  %v864_v59 = vsel %vm170_vm3, %v857_v19, %v860_v45  ;;  %v837_v3 = vmul.f32 %v835_v49, %v1676_v23 }
 0x17b   :  { %311 = vadd.xlane.f32.xlu1 %v310_v5  ;;  %v838_v5 = vmul.f32 %v836_v34, %v1676_v23  ;;  %v871_v23 = vmul.f32 %v1664_v15, %v1736_v1 }
 0x17d   :  { %v878_v30 = vpop.permute.xlu0 %877  ;;  %v873_v34 = vmul.f32 %v871_v23, %v1690_v31  ;;  %v1929_v23 = vld [vmem:[%s2542_s5 + $0xd8] sm:$0xff] }
 0x17e   :  { %v881_v58 = vsel %vm203_vm4, %v878_v30, %v880_v29 }
 0x194   :  { %844 = vrot.lane.b32.xlu1 %v1664_v15, %s1536_s11 }
 0x19c   :  { %892 = vrot.lane.b32.xlu1 %v1664_v15, %s1545_s20  ;;  %v885_v15 = vsel %vm203_vm4, %v880_v29, %v878_v30 }
 0x1a4   :  { %909 = vrot.lane.b32.xlu1 %v1657_v14, %s1546_s21  ;;  %v1881_v14 = vld [vmem:[%s2542_s5 + $0x70] sm:$0xff] }
 0x1a5   :  { %348 = vmatpush.msra.mxu0 %v1881_v14 }
 0x1ee   :  { %v312_v21 = vpop.xlane.xlu1 %311 }
 0x1ef   :  { %v313_v22 = vrot.slane %v312_v21, 4 }
 0x1f1   :  { %v314_v0 = vadd.f32 %v313_v22, %v312_v21  ;;  %v865_v22 = vmul.f32 %v864_v59, %v1722_v51 }
 0x1f3   :  { %v315_v37 = vrot.slane %v314_v0, 2  ;;  %v867_v33 = vmul.f32 %v865_v22, %v1686_v28 }
 0x1f5   :  { %v316_v43 = vadd.f32 %v315_v37, %v314_v0  ;;  %v866_v0 = vmul.f32 %v861_v62, %v1724_v52  ;;  %v908_v37 = vpop.permute.xlu2 %907 }
 0x1f7   :  { %v317_v46 = vrot.slane %v316_v43, 1  ;;  %v868_v47 = vmul.f32 %v866_v0, %v1686_v28  ;;  %v874_v28 = vmul.f32 %v872_v25, %v1690_v31  ;;  %v1901_v31 = vld [vmem:[%s2542_s5 + $0xe8] sm:$0xff] }
 0x1f9   :  { %v318_v27 = vadd.f32 %v317_v46, %v316_v43  ;;  %v895_v43 = vpop.permute.xlu0 %894  ;;  %v839_v46 = vadd.f32 %v837_v3, %v824_v12  ;;  %v1896_v3 = vld [vmem:[%s2542_s5 + $0x68] sm:$0xff] }
 0x1fa   :  { %349 = vmatpush.msra.mxu0 %v1896_v3 }
 0x1fb   :  { %1439 = vpush %v318_v27  ;;  %v840_v27 = vadd.f32 %v838_v5, %v825_v13  ;;  %v886_v5 = vmul.f32 %v881_v58, %v1743_v7 }
 0x1fd   :  { %v925_v22 = vpop.permute.xlu2 %924  ;;  %v888_v25 = vmul.f32 %v886_v5, %v1726_v54 }
 0x201   :  { %v923_v0 = vpop.permute.xlu0 %922 }
 0x206   :  { %v845_v10 = vpop.permute.xlu1 %844 }
 0x207   :  { %v846_v18 = vsel %vm148_vm1, %v845_v10, %v842_v38  ;;  %v849_v21 = vsel %vm148_vm1, %v842_v38, %v845_v10  ;;  %v887_v10 = vmul.f32 %v885_v15, %v1745_v8 }
 0x208   :  { %v850_v19 = vmul.f32 %v849_v21, %v1706_v39  ;;  %v851_v45 = vmul.f32 %v846_v18, %v1712_v42  ;;  %v1910_v18 = vld [vmem:[%s2542_s5 + $0x60] sm:$0xff] }
 0x209   :  { %v1915_v21 = vld [vmem:[%s2542_s5 + $0xe0] sm:$0xff]  ;;  %350 = vmatpush.msra.mxu0 %v1910_v18 }
 0x20a   :  { %v852_v38 = vmul.f32 %v850_v19, %v1678_v24  ;;  %v853_v32 = vmul.f32 %v851_v45, %v1678_v24  ;;  %v1886_v24 = vld [vmem:[%s2542_s5 + $0xf0] sm:$0xff]  ;;  %v1924_v45 = vld [vmem:[%s2542_s5 + $0x58] sm:$0xff] }
 0x20b   :  { %368 = vmatpush.msra.mxu1 %v1886_v24  ;;  %351 = vmatpush.msra.mxu0 %v1924_v45 }
 0x20c   :  { %v854_v48 = vadd.f32 %v852_v38, %v839_v46  ;;  %v855_v49 = vadd.f32 %v853_v32, %v840_v27  ;;  %v889_v46 = vmul.f32 %v887_v10, %v1726_v54  ;;  %v926_v27 = vsel %vm269_vm7, %v923_v0, %v925_v22  ;;  %v1940_v32 = vld [vmem:[%s2542_s5 + $0x50] sm:$0xff] }
 0x20d   :  { %369 = vmatpush.msra.mxu1 %v1901_v31  ;;  %v930_v38 = vsel %vm269_vm7, %v925_v22, %v923_v0  ;;  %352 = vmatpush.msra.mxu0 %v1940_v32 }
 0x20e   :  { %v869_v61 = vadd.f32 %v867_v33, %v854_v48  ;;  %v870_v62 = vadd.f32 %v868_v47, %v855_v49  ;;  %v893_v59 = vpop.permute.xlu1 %892  ;;  %v1945_v33 = vld [vmem:[%s2542_s5 + $0xd0] sm:$0xff] }
 0x20f   :  { %v896_v29 = vsel %vm225_vm5, %v893_v59, %v895_v43  ;;  %v900_v30 = vsel %vm225_vm5, %v895_v43, %v893_v59  ;;  %370 = vmatpush.msra.mxu1 %v1915_v21 }
 0x210   :  { %v875_v12 = vadd.f32 %v873_v34, %v869_v61  ;;  %v876_v13 = vadd.f32 %v874_v28, %v870_v62  ;;  %v901_v43 = vmul.f32 %v896_v29, %v1752_v16  ;;  %v902_v19 = vmul.f32 %v900_v30, %v1754_v17  ;;  %v1956_v28 = vld [vmem:[%s2542_s5 + $0x48] sm:$0xff]  ;;  %v1972_v29 = vld [vmem:[%s2542_s5 + $0x40] sm:$0xff] }
 0x211   :  { %371 = vmatpush.msra.mxu1 %v1929_v23  ;;  %v1961_v61 = vld [vmem:[%s2542_s5 + $0xc8] sm:$0xff]  ;;  %v932_v62 = vmul.f32 %v1788_v57, %v930_v38  ;;  %353 = vmatpush.msra.mxu0 %v1956_v28  ;;  %v1977_v30 = vld [vmem:[%s2542_s5 + $0xc0] sm:$0xff] }
 0x212   :  { %v890_v47 = vadd.f32 %v888_v25, %v875_v12  ;;  %v891_v54 = vadd.f32 %v889_v46, %v876_v13  ;;  %v903_v48 = vmul.f32 %v901_v43, %v1766_v26  ;;  %v904_v49 = vmul.f32 %v902_v19, %v1766_v26  ;;  %v1986_v12 = vld [vmem:[%s2542_s5 + $0x38] sm:$0xff]  ;;  %v2000_v19 = vld [vmem:[%s2542_s5 + $0x30] sm:$0xff]  ;;  %v2021_v38 = vld [vmem:[%s2542_s5 + $0xa8] sm:$0xff] }
 0x213   :  { %372 = vmatpush.msra.mxu1 %v1945_v33  ;;  %v931_v26 = vmul.f32 %v1783_v56, %v926_v27  ;;  %354 = vmatpush.msra.mxu0 %v1972_v29  ;;  %v1991_v13 = vld [vmem:[%s2542_s5 + $0xb8] sm:$0xff]  ;;  %v934_v0 = vmul.f32 %v932_v62, %v1802_v20  ;;  %v2005_v25 = vld [vmem:[%s2542_s5 + $0xb0] sm:$0xff]  ;;  %v2070_v62 = vld [vmem:[%s2542_s5 + $0x88] sm:$0xff] }
 0x214   :  { %v905_v56 = vadd.f32 %v903_v48, %v890_v47  ;;  %v906_v57 = vadd.f32 %v904_v49, %v891_v54  ;;  %v2026_v47 = vld [vmem:[%s2542_s5 + $0x20] sm:$0xff]  ;;  %v2040_v49 = vld [vmem:[%s2542_s5 + $0x18] sm:$0xff] }
 0x215   :  { %373 = vmatpush.msra.mxu1 %v1961_v61  ;;  %v933_v22 = vmul.f32 %v931_v26, %v1802_v20  ;;  %355 = vmatpush.msra.mxu0 %v1986_v12  ;;  %v2016_v20 = vld [vmem:[%s2542_s5 + $0x28] sm:$0xff]  ;;  %v2034_v48 = vld [vmem:[%s2542_s5 + $0xa0] sm:$0xff] }
 0x216   :  { %v910_v34 = vpop.permute.xlu1 %909  ;;  %v2064_v26 = vld [vmem:[%s2542_s5 + $0x8] sm:$0xff] }
 0x217   :  { %v911_v58 = vsel %vm247_vm6, %v908_v37, %v910_v34  ;;  %v915_v15 = vsel %vm247_vm6, %v910_v34, %v908_v37  ;;  %374 = vmatpush.msra.mxu1 %v1977_v30  ;;  %356 = vmatpush.msra.mxu0 %v2000_v19  ;;  %v2046_v34 = vld [vmem:[%s2542_s5 + $0x98] sm:$0xff] }
 0x218   :  { %v916_v59 = vmul.f32 %v911_v58, %v1764_v4  ;;  %v917_v37 = vmul.f32 %v915_v15, %v1768_v44  ;;  %v2052_v58 = vld [vmem:[%s2542_s5 + $0x10] sm:$0xff] }
 0x219   :  { %375 = vmatpush.msra.mxu1 %v1991_v13  ;;  %357 = vmatpush.msra.mxu0 %v2016_v20  ;;  %v2058_v15 = vld [vmem:[%s2542_s5 + $0x90] sm:$0xff] }
 0x21a   :  { %v918_v5 = vmul.f32 %v916_v59, %v1798_v11  ;;  %v919_v10 = vmul.f32 %v917_v37, %v1798_v11  ;;  %v2076_v59 = vld [vmem:[%s2542_s5] sm:$0xff] }
 0x21b   :  { %376 = vmatpush.msra.mxu1 %v2005_v25  ;;  %358 = vmatpush.msra.mxu0 %v2026_v47  ;;  %v2082_v37 = vld [vmem:[%s2542_s5 + $0x80] sm:$0xff] }
 0x21c   :  { %v920_v43 = vadd.f32 %v918_v5, %v905_v56  ;;  %v921_v11 = vadd.f32 %v919_v10, %v906_v57 }
 0x21d   :  { %377 = vmatpush.msra.mxu1 %v2021_v38  ;;  %359 = vmatpush.msra.mxu0 %v2040_v49 }
 0x21e   :  { %v2007_v46 = vadd.f32 %v933_v22, %v920_v43  ;;  %v2009_v27 = vadd.f32 %v934_v0, %v921_v11 }
 0x21f   :  { %378 = vmatpush.msra.mxu1 %v2034_v48  ;;  %360 = vmatpush.msra.mxu0 %v2052_v58 }
 0x220   :  { %v937_v54 = vadd.f32 %v2009_v27, %v2007_v46 }
 0x221   :  { %379 = vmatpush.msra.mxu1 %v2046_v34  ;;  %361 = vmatpush.msra.mxu0 %v2064_v26 }
 0x222   :  { %938 = vadd.xlane.f32.xlu1 %v937_v54 }
 0x223   :  { %380 = vmatpush.msra.mxu1 %v2058_v15  ;;  %362 = vmatpush.msra.mxu0 %v2076_v59 }
 0x225   :  { %381 = vmatpush.msra.mxu1 %v2070_v62 }
 0x227   :  { %382 = vmatpush.msra.mxu1 %v2082_v37 }
 0x22c   :  { %s1440_s17 = spop %1439 }
 0x22d   :  { %v320_v56 = vstv %s1440_s17 }
 0x22e   :  { %v321_v57 = vmul.f32 %v320_v56, %v1814_v60 }
 0x230   :  { %v322_v5 = vadd.f32 1e-05, %v321_v57 }
 0x232   :  { %1489 = vrsqrt.f32 %v322_v5  ;;  %vm329_vm10 = vweird.f32 %v322_v5 }
 0x238   :  { %v1490_v10 = vpop.eup %1489 }
 0x239   :  { %v324_v22 = vmul.f32 %v1490_v10, %v322_v5  ;;  %vm330_vm9 = vweird.f32 %v1490_v10  ;;  %v97_v5 = vld [vmem:[%s2543_s2 + $0x38] sm:$0xff] }
 0x23a   :  { %vm331_vm11 = vmor %vm329_vm10, %vm330_vm9  ;;  %399 = vmatpush.msra.mxu2 %v97_v5  ;;  %vm2559_vm9 = vcmask 1043456  }
 0x23b   :  { %v325_v0 = vmul.f32 %v1490_v10, %v324_v22 }
 0x23d   :  { %v326_v43 = vmul.f32 0.5, %v325_v0 }
 0x23f   :  { %v327_v11 = vsub.f32 1.5, %v326_v43 }
 0x241   :  { %v328_v54 = vmul.f32 %v1490_v10, %v327_v11 }
 0x243   :  { %v332_v36 = vsel %vm331_vm11, %v1490_v10, %v328_v54  ;;  %v91_v54 = vld [vmem:[%s2543_s2 + $0x8] sm:$0xff] }
 0x244   :  { %v333_v35 = vmul.f32 %v332_v36, %v1817_v63  ;;  %v334_v41 = vmul.f32 %v332_v36, %v1819_v53  ;;  %v96_v63 = vld [vmem:[%s2543_s2 + $0x30] sm:$0xff]  ;;  %v94_v36 = vld [vmem:[%s2543_s2 + $0x20] sm:$0xff] }
 0x245   :  { %400 = vmatpush.msra.mxu2 %v96_v63 }
 0x246   :  { %v339_v40 = vmul.f32 %v1831_v6, %v333_v35  ;;  %v340_v56 = vmul.f32 %v1831_v6, %v334_v41  ;;  %v95_v35 = vld [vmem:[%s2543_s2 + $0x28] sm:$0xff]  ;;  %v92_v41 = vld [vmem:[%s2543_s2 + $0x10] sm:$0xff] }
 0x247   :  { %401 = vmatpush.msra.mxu2 %v95_v35 }
 0x248   :  { %v345_v57 = vadd.f32 %v1833_v9, %v339_v40  ;;  %v346_v42 = vadd.f32 %v1833_v9, %v340_v56  ;;  %v93_v40 = vld [vmem:[%s2543_s2 + $0x18] sm:$0xff]  ;;  %v90_v56 = vld [vmem:[%s2543_s2] sm:$0xff] }
 0x249   :  { %402 = vmatpush.msra.mxu2 %v94_v36 }
 0x24a   :  { %363 = vmatmul.f32.vlgmr.msra.gmra.mxu0 %v345_v57  ;;  %383 = vmatmul.f32.vlgmr.msra.gmra.mxu1 %v346_v42 }
 0x24b   :  { %403 = vmatpush.msra.mxu2 %v93_v40 }
 0x24d   :  { %404 = vmatpush.msra.mxu2 %v92_v41 }
 0x24f   :  { %405 = vmatpush.msra.mxu2 %v91_v54  ;;  %v72_v54 = vld [vmem:[%s2544_s6 + $0x18] sm:$0xff] }
 0x251   :  { %406 = vmatpush.msra.mxu2 %v90_v56  ;;  %v70_v56 = vld [vmem:[%s2544_s6 + $0x8] sm:$0xff] }
 0x295   :  { %v939_v42 = vpop.xlane.xlu1 %938 }
 0x296   :  { %v940_v53 = vrot.slane %v939_v42, 4 }
 0x298   :  { %v941_v10 = vadd.f32 %v940_v53, %v939_v42 }
 0x29a   :  { %v942_v22 = vrot.slane %v941_v10, 2 }
 0x29c   :  { %v943_v0 = vadd.f32 %v942_v22, %v941_v10  ;;  %v84_v22 = vld [vmem:[%s2544_s6 + $0x78] sm:$0xff] }
 0x29d   :  { %454 = vmatpush.msrb.mxu2 %v84_v22 }
 0x29e   :  { %v944_v43 = vrot.slane %v943_v0, 1 }
 0x2a0   :  { %v945_v11 = vadd.f32 %v944_v43, %v943_v0  ;;  %v78_v0 = vld [vmem:[%s2544_s6 + $0x48] sm:$0xff]  ;;  %v76_v43 = vld [vmem:[%s2544_s6 + $0x38] sm:$0xff] }
 0x2a2   :  { %1441 = vpush %v945_v11  ;;  %v74_v11 = vld [vmem:[%s2544_s6 + $0x28] sm:$0xff] }
 0x2c7   :  { %v364_v57 = vpop.f32.mrf.mxu0  ;;  %v384_v5 = vpop.f32.mrf.mxu1 }
 0x2c8   :  { %v385_v63 = vadd.f32 %v384_v5, %v364_v57 }
 0x2ca   :  { %1406 = vmatmul.msk.f32.vlgmr.msra.gmra.mxu2 %vm387_vm12, %v385_v63 }
 0x2d3   :  { %s1442_s24 = spop %1441 }
 0x2d4   :  { %v947_v35 = vstv %s1442_s24 }
 0x2d5   :  { %v948_v36 = vmul.f32 %v947_v35, %v1814_v60 }
 0x2d7   :  { %v2121_v40 = vsub.f32 %v2007_v46, %v948_v36  ;;  %v2124_v41 = vsub.f32 %v2009_v27, %v948_v36  ;;  %v82_v46 = vld [vmem:[%s2544_s6 + $0x68] sm:$0xff]  ;;  %v80_v27 = vld [vmem:[%s2544_s6 + $0x58] sm:$0xff] }
 0x2d8   :  { %455 = vmatpush.msrb.mxu2 %v82_v46 }
 0x2d9   :  { %v951_v42 = vmul.f32 %v2121_v40, %v2121_v40  ;;  %v952_v53 = vmul.f32 %v2124_v41, %v2124_v41 }
 0x2da   :  { %456 = vmatpush.msrb.mxu2 %v80_v27 }
 0x2db   :  { %v953_v10 = vadd.f32 %v952_v53, %v951_v42 }
 0x2dc   :  { %457 = vmatpush.msrb.mxu2 %v78_v0 }
 0x2dd   :  { %954 = vadd.xlane.f32.xlu1 %v953_v10 }
 0x2de   :  { %458 = vmatpush.msrb.mxu2 %v76_v43 }
 0x2e0   :  { %459 = vmatpush.msrb.mxu2 %v74_v11 }
 0x2e2   :  { %460 = vmatpush.msrb.mxu2 %v72_v54 }
 0x2e4   :  { %461 = vmatpush.msrb.mxu2 %v70_v56 }
 0x2e6   :  { %982 = vmatpush.msra.mxu2 %v1844_v50 }
 0x2e8   :  { %983 = vmatpush.msra.mxu2 %v1881_v14  ;;  %v89_v14 = vld [vmem:[%s2545_s1] sm:$0xf] }
 0x2e9   :  { %1408 = vmatmul.msk.f32.vlgmr.msrb.gmra.mxu2 %vm387_vm12, %v89_v14 }
 0x2ea   :  { %984 = vmatpush.msra.mxu2 %v1896_v3  ;;  %v2181_v3 = vld [vmem:[%s2544_s6 + $0x70] sm:$0xff] }
 0x2eb   :  { %434 = vmatpush.msra.mxu3 %v2181_v3 }
 0x2ec   :  { %985 = vmatpush.msra.mxu2 %v1910_v18  ;;  %v2186_v18 = vld [vmem:[%s2544_s6 + $0x60] sm:$0xff] }
 0x2ed   :  { %435 = vmatpush.msra.mxu3 %v2186_v18 }
 0x2ee   :  { %986 = vmatpush.msra.mxu2 %v1924_v45  ;;  %v2192_v45 = vld [vmem:[%s2544_s6 + $0x50] sm:$0xff] }
 0x2ef   :  { %436 = vmatpush.msra.mxu3 %v2192_v45 }
 0x2f0   :  { %987 = vmatpush.msra.mxu2 %v1940_v32 }
 0x2f2   :  { %988 = vmatpush.msra.mxu2 %v1956_v28 }
 0x2f4   :  { %989 = vmatpush.msra.mxu2 %v1972_v29  ;;  %v2199_v29 = vld [vmem:[%s2544_s6 + $0x40] sm:$0xff] }
 0x2f5   :  { %437 = vmatpush.msra.mxu3 %v2199_v29 }
 0x2f6   :  { %990 = vmatpush.msra.mxu2 %v1986_v12 }
 0x2f8   :  { %991 = vmatpush.msra.mxu2 %v2000_v19  ;;  %v2205_v19 = vld [vmem:[%s2544_s6 + $0x30] sm:$0xff] }
 0x2f9   :  { %438 = vmatpush.msra.mxu3 %v2205_v19 }
 0x2fa   :  { %992 = vmatpush.msra.mxu2 %v2016_v20 }
 0x2fc   :  { %993 = vmatpush.msra.mxu2 %v2026_v47 }
 0x2fe   :  { %994 = vmatpush.msra.mxu2 %v2040_v49 }
 0x300   :  { %995 = vmatpush.msra.mxu2 %v2052_v58 }
 0x302   :  { %996 = vmatpush.msra.mxu2 %v2064_v26 }
 0x304   :  { %997 = vmatpush.msra.mxu2 %v2076_v59 }
 0x306   :  { %1087 = vmatpush.msrb.mxu2 %v84_v22  ;;  %v2218_v22 = vld [vmem:[%s2544_s6 + $0x10] sm:$0xff] }
 0x308   :  { %1088 = vmatpush.msrb.mxu2 %v82_v46 }
 0x30a   :  { %1089 = vmatpush.msrb.mxu2 %v80_v27 }
 0x30c   :  { %1090 = vmatpush.msrb.mxu2 %v78_v0  ;;  %v2225_v0 = vld [vmem:[%s2544_s6] sm:$0xff] }
 0x30e   :  { %1091 = vmatpush.msrb.mxu2 %v76_v43 }
 0x310   :  { %1092 = vmatpush.msrb.mxu2 %v74_v11 }
 0x312   :  { %1093 = vmatpush.msrb.mxu2 %v72_v54  ;;  %v2234_v54 = vld [vmem:[%s2545_s1 + $0x4] sm:$0xf] }
 0x314   :  { %1094 = vmatpush.msrb.mxu2 %v70_v56 }
 0x34d   :  { %v2154_v57 = vpop.f32.mrf.mxu2 }
 0x34e   :  { %v412_v5 = vsel %vm2560_vm13, %v2154_v57, -inf }
 0x34f   :  { %413 = vmax.xlane.f32.xlu0 %v412_v5 }
 0x350   :  { %v955_v63 = vpop.xlane.xlu1 %954 }
 0x351   :  { %v956_v35 = vrot.slane %v955_v63, 4 }
 0x353   :  { %v957_v36 = vadd.f32 %v956_v35, %v955_v63 }
 0x355   :  { %v958_v42 = vrot.slane %v957_v36, 2 }
 0x357   :  { %v959_v53 = vadd.f32 %v958_v42, %v957_v36 }
 0x359   :  { %v960_v50 = vrot.slane %v959_v53, 1 }
 0x35b   :  { %v961_v10 = vadd.f32 %v960_v50, %v959_v53 }
 0x35d   :  { %1443 = vpush %v961_v10 }
 0x36c   :  { %v463_v36 = vpop.f32.mrf.mxu2 }
 0x38e   :  { %s1444_s15 = spop %1443 }
 0x38f   :  { %v963_v32 = vstv %s1444_s15 }
 0x390   :  { %v964_v28 = vmul.f32 %v963_v32, %v1814_v60  ;;  %v2211_v60 = vld [vmem:[%s2544_s6 + $0x20] sm:$0xff] }
 0x391   :  { %439 = vmatpush.msra.mxu3 %v2211_v60 }
 0x392   :  { %v965_v12 = vadd.f32 1e-05, %v964_v28 }
 0x393   :  { %440 = vmatpush.msra.mxu3 %v2218_v22 }
 0x394   :  { %1491 = vrsqrt.f32 %v965_v12  ;;  %vm972_vm15 = vweird.f32 %v965_v12 }
 0x395   :  { %441 = vmatpush.msra.mxu3 %v2225_v0 }
 0x396   :  { %1407 = vmatmul.msk.f32.vlgmr.msra.gmra.mxu3 %vm387_vm12, %v89_v14 }
 0x397   :  { %1411 = vmatpush.msk.msrb.mxu3 %vm2559_vm9, %v463_v36 }
 0x399   :  { %1002 = vmatpush.msra.mxu3 %v1849_v55 }
 0x39a   :  { %v1492_v20 = vpop.eup %1491 }
 0x39b   :  { %v967_v47 = vmul.f32 %v1492_v20, %v965_v12  ;;  %vm973_vm14 = vweird.f32 %v1492_v20  ;;  %1003 = vmatpush.msra.mxu3 %v1886_v24 }
 0x39c   :  { %vm974_vm8 = vmor %vm972_vm15, %vm973_vm14 }
 0x39d   :  { %v968_v49 = vmul.f32 %v1492_v20, %v967_v47  ;;  %1004 = vmatpush.msra.mxu3 %v1901_v31 }
 0x39f   :  { %v969_v58 = vmul.f32 0.5, %v968_v49  ;;  %1005 = vmatpush.msra.mxu3 %v1915_v21 }
 0x3a1   :  { %v970_v26 = vsub.f32 1.5, %v969_v58  ;;  %1006 = vmatpush.msra.mxu3 %v1929_v23 }
 0x3a3   :  { %v971_v59 = vmul.f32 %v1492_v20, %v970_v26  ;;  %1007 = vmatpush.msra.mxu3 %v1945_v33 }
 0x3a5   :  { %v975_v46 = vsel %vm974_vm8, %v1492_v20, %v971_v59  ;;  %1008 = vmatpush.msra.mxu3 %v1961_v61 }
 0x3a6   :  { %v976_v27 = vmul.f32 %v975_v46, %v2121_v40  ;;  %v977_v21 = vmul.f32 %v975_v46, %v2124_v41 }
 0x3a7   :  { %1009 = vmatpush.msra.mxu3 %v1977_v30  ;;  %v2266_v30 = vld [vmem:[%s2546_s7] sm:$0x3] }
 0x3a8   :  { %v978_v43 = vmul.f32 %v976_v27, %v1831_v6  ;;  %v979_v33 = vmul.f32 %v977_v21, %v1831_v6  ;;  %v468_v6 = vperm.slane %v2266_v30, 1 }
 0x3a9   :  { %1010 = vmatpush.msra.mxu3 %v1991_v13  ;;  %v467_v13 = vperm.slane %v2266_v30, 0 }
 0x3aa   :  { %v980_v11 = vadd.f32 %v978_v43, %v1833_v9  ;;  %v981_v61 = vadd.f32 %v979_v33, %v1833_v9 }
 0x3ab   :  { %1011 = vmatpush.msra.mxu3 %v2005_v25 }
 0x3ac   :  { %998 = vmatmul.f32.vlgmr.msra.gmra.mxu2 %v980_v11 }
 0x3ad   :  { %1012 = vmatpush.msra.mxu3 %v2021_v38 }
 0x3af   :  { %1013 = vmatpush.msra.mxu3 %v2034_v48 }
 0x3b1   :  { %1014 = vmatpush.msra.mxu3 %v2046_v34 }
 0x3b3   :  { %1015 = vmatpush.msra.mxu3 %v2058_v15 }
 0x3b4   :  { %1428 = vmatmul.msk.f32.vlgmr.msrb.gmra.mxu2 %vm387_vm12, %v2234_v54 }
 0x3b5   :  { %1016 = vmatpush.msra.mxu3 %v2070_v62 }
 0x3b7   :  { %1017 = vmatpush.msra.mxu3 %v2082_v37 }
 0x3c2   :  { %v414_v40 = vpop.xlane.xlu0 %413 }
 0x3c3   :  { %v415_v56 = vsub.f32 %v2154_v57, %v414_v40 }
 0x3c5   :  { %v416_v5 = vmul.f32 1.442695, %v415_v56 }
 0x3c7   :  { %1493 = vpow2.f32 %v416_v5 }
 0x3cd   :  { %v1494_v63 = vpop.eup %1493 }
 0x3ce   :  { %v418_v35 = vsel %vm2560_vm13, %v1494_v63, 0.0 }
 0x3cf   :  { %419 = vadd.xlane.f32.xlu2 %v418_v35 }
 0x419   :  { %v443_v55 = vpop.f32.mrf.mxu3 }
 0x41a   :  { %1409 = vmatpush.msk.msrb.mxu0 %vm2559_vm9, %v443_v55 }
 0x442   :  { %v420_v24 = vpop.xlane.xlu2 %419 }
 0x443   :  { %1495 = vrcp.f32 %v420_v24 }
 0x449   :  { %v1496_v31 = vpop.eup %1495 }
 0x44a   :  { %v422_v23 = vmul.f32 %v1496_v31, %v1494_v63 }
 0x44c   :  { %1410 = vmatmul.msk.f32.vlgmr.msrb.gmra.mxu0 %vm2560_vm13, %v422_v23  ;;  %1412 = vmatmul.msk.f32.vlgmr.msrb.gmra.mxu3 %vm2560_vm13, %v422_v23 }
 0x454   :  { %1018 = vmatmul.f32.vlgmr.msra.gmra.mxu3 %v981_v61 }
 0x4c9   :  { %v498_v25 = vpop.f32.mrf.mxu0 }
 0x4ca   :  { %v2271_v38 = vadd.f32 %v498_v25, %v467_v13 }
 0x4cc   :  { %v2274_v48 = vmul.f32 0.70710677, %v2271_v38 }
 0x4ce   :  { %v529_v9 = vand.u32 2147483647, %v2274_v48 }
 0x4cf   :  { %v518_v34 = vpop.f32.mrf.mxu3 }
 0x4d0   :  { %v531_v15 = vmul.f32 0.3275911, %v529_v9  ;;  %v2280_v62 = vadd.f32 %v518_v34, %v468_v6  ;;  %v583_v46 = vsub.f32 0.0, %v529_v9 }
 0x4d2   :  { %v533_v37 = vadd.f32 1.0, %v531_v15  ;;  %v2283_v41 = vmul.f32 0.70710677, %v2280_v62  ;;  %v585_v63 = vmul.f32 %v583_v46, %v529_v9 }
 0x4d4   :  { %1497 = vrcp.f32 %v533_v37  ;;  %v530_v57 = vand.u32 2147483647, %v2283_v41  ;;  %v546_v32 = vand.u32 2147483648, %v533_v37  ;;  %v544_v12 = vand.u32 2147483647, %v533_v37 }
 0x4d5   :  { %vm540_vm11 = vweird.f32 %v533_v37  ;;  %v587_v33 = vmul.f32 1.442695, %v585_v63 }
 0x4d6   :  { %v532_v42 = vmul.f32 0.3275911, %v530_v57  ;;  %v547_v49 = vor.u32 1.1754944e-38, %v546_v32  ;;  %vm545_vm15 = vcmp.eq.f32.partialorder %v544_v12, 8.507059e+37  ;;  %v584_v23 = vsub.f32 0.0, %v530_v57 }
 0x4d8   :  { %v534_v53 = vadd.f32 1.0, %v532_v42 }
 0x4da   :  { %v1498_v50 = vpop.eup %1497  ;;  %1499 = vrcp.f32 %v534_v53  ;;  %v561_v11 = vand.u32 2147483648, %v534_v53  ;;  %v559_v56 = vand.u32 2147483647, %v534_v53  ;;  %vm555_vm9 = vweird.f32 %v534_v53 }
 0x4db   :  { %v536_v10 = vmul.f32 %v1498_v50, %v533_v37  ;;  %vm541_vm10 = vweird.f32 %v1498_v50  ;;  %v586_v37 = vmul.f32 %v584_v23, %v530_v57  ;;  %1501 = vpow2.f32 %v587_v33  ;;  %v2313_v23 = vld [vmem:[%s2540_s3 + $0x10] ss:$0 sm:$0xff] }
 0x4dc   :  { %vm542_vm14 = vmor %vm540_vm11, %vm541_vm10  ;;  %v562_v55 = vor.u32 1.1754944e-38, %v561_v11  ;;  %vm560_vm10 = vcmp.eq.f32.partialorder %v559_v56, 8.507059e+37  ;;  %v521_v11 = vmul.f32 0.5, %v2271_v38  ;;  %vm693_vm11 = vcmask 588800  }
 0x4dd   :  { %v537_v14 = vsub.f32 1.0, %v536_v10 }
 0x4df   :  { %v538_v28 = vmul.f32 %v1498_v50, %v537_v14 }
 0x4e0   :  { %v1500_v20 = vpop.eup %1499 }
 0x4e1   :  { %v539_v47 = vadd.f32 %v1498_v50, %v538_v28  ;;  %v551_v58 = vmul.f32 %v1500_v20, %v534_v53  ;;  %vm556_vm8 = vweird.f32 %v1500_v20  ;;  %v589_v53 = vmul.f32 1.442695, %v586_v37  ;;  %v1502_v28 = vpop.eup %1501 }
 0x4e2   :  { %vm557_vm13 = vmor %vm555_vm9, %vm556_vm8  ;;  %vm526_vm9 = vcmp.ge.f32.partialorder %v2283_v41, 0.0  ;;  %vm2573_vm8 = vcmask 1043456  }
 0x4e3   :  { %v543_v26 = vsel %vm542_vm14, %v1498_v50, %v539_v47  ;;  %v552_v27 = vsub.f32 1.0, %v551_v58  ;;  %1503 = vpow2.f32 %v589_v53  ;;  %v1554_v58 = vmov -1.0  }
 0x4e4   :  { %v548_v59 = vsel %vm545_vm15, %v547_v49, %v543_v26  ;;  %vm2571_vm14 = vcmask 31744  }
 0x4e5   :  { %v565_v43 = vmul.f32 1.0614054, %v548_v59  ;;  %v553_v40 = vmul.f32 %v1500_v20, %v552_v27  ;;  %vm2572_vm15 = vmmov %vm2571_vm14 }
 0x4e7   :  { %v567_v5 = vadd.f32 -1.4531521, %v565_v43  ;;  %v554_v35 = vadd.f32 %v1500_v20, %v553_v40 }
 0x4e9   :  { %v569_v36 = vmul.f32 %v567_v5, %v548_v59  ;;  %v558_v24 = vsel %vm557_vm13, %v1500_v20, %v554_v35  ;;  %vm525_vm13 = vcmp.ge.f32.partialorder %v2274_v48, 0.0  ;;  %v1504_v43 = vpop.eup %1503  ;;  %v528_v48 = vsel %vm526_vm9, 1.0, %v1554_v58 }
 0x4ea   :  { %v563_v21 = vsel %vm560_vm10, %v562_v55, %v558_v24  ;;  %v527_v26 = vsel %vm525_vm13, 1.0, %v1554_v58  ;;  %vm2575_vm10 = vmmov %vm2571_vm14 }
 0x4eb   :  { %v571_v31 = vadd.f32 1.4214138, %v569_v36  ;;  %v566_v61 = vmul.f32 1.0614054, %v563_v21  ;;  %v522_v36 = vmul.f32 0.5, %v2280_v62  ;;  %vm2576_vm13 = vmmov %vm2575_vm10 }
 0x4ed   :  { %v573_v25 = vmul.f32 %v571_v31, %v548_v59  ;;  %v568_v34 = vadd.f32 -1.4531521, %v566_v61  ;;  %v2319_v61 = vld [vmem:[%s2540_s3 + $0x18] ss:$0 sm:$0xff] }
 0x4ef   :  { %v575_v15 = vadd.f32 -0.28449672, %v573_v25  ;;  %v570_v42 = vmul.f32 %v568_v34, %v563_v21 }
 0x4f1   :  { %v577_v50 = vmul.f32 %v575_v15, %v548_v59  ;;  %v572_v9 = vadd.f32 1.4214138, %v570_v42 }
 0x4f3   :  { %v579_v10 = vadd.f32 0.2548296, %v577_v50  ;;  %v574_v14 = vmul.f32 %v572_v9, %v563_v21 }
 0x4f5   :  { %v581_v32 = vmul.f32 %v579_v10, %v548_v59  ;;  %v576_v12 = vadd.f32 -0.28449672, %v574_v14 }
 0x4f7   :  { %v591_v20 = vmul.f32 %v1502_v28, %v581_v32  ;;  %v578_v47 = vmul.f32 %v576_v12, %v563_v21 }
 0x4f9   :  { %v593_v49 = vsub.f32 1.0, %v591_v20  ;;  %v580_v57 = vadd.f32 0.2548296, %v578_v47 }
 0x4fb   :  { %v595_v46 = vmul.f32 %v593_v49, %v527_v26  ;;  %v582_v27 = vmul.f32 %v580_v57, %v563_v21 }
 0x4fd   :  { %v597_v40 = vadd.f32 1.0, %v595_v46  ;;  %v592_v59 = vmul.f32 %v1504_v43, %v582_v27 }
 0x4ff   :  { %v599_v56 = vmul.f32 %v597_v40, %v521_v11  ;;  %v594_v5 = vsub.f32 1.0, %v592_v59 }
 0x501   :  { %660 = vrot.lane.b32.xlu2 %v599_v56, %s1545_s20  ;;  %671 = vrot.lane.b32.xlu1 %v599_v56, %s1546_s21  ;;  %v596_v63 = vmul.f32 %v594_v5, %v528_v48  ;;  %v647_v40 = vmul.f32 %v599_v56, %v1736_v1 }
 0x502   :  { %682 = vrot.lane.b32.xlu0 %v599_v56, %s1548_s22 }
 0x503   :  { %v598_v35 = vadd.f32 1.0, %v596_v63 }
 0x505   :  { %v600_v55 = vmul.f32 %v598_v35, %v522_v36 }
 0x507   :  { %v648_v11 = vmul.f32 %v600_v55, %v1738_v2 }
 0x509   :  { %684 = vrot.lane.b32.xlu2 %v600_v55, %s1548_s22  ;;  %649 = vrot.lane.b32.xlu1 %v599_v56, %s1543_s19 }
 0x50a   :  { %628 = vrot.lane.b32.xlu0 %v599_v56, %s1536_s11 }
 0x511   :  { %651 = vrot.lane.b32.xlu2 %v600_v55, %s1543_s19  ;;  %639 = vrot.lane.b32.xlu1 %v599_v56, %s1540_s18 }
 0x512   :  { %673 = vrot.lane.b32.xlu0 %v600_v55, %s1546_s21 }
 0x519   :  { %625 = vrot.lane.b32.xlu2 %v600_v55, %s1536_s11  ;;  %614 = vrot.lane.b32.xlu1 %v600_v55, %s1537_s12 }
 0x51a   :  { %662 = vrot.lane.b32.xlu0 %v600_v55, %s1545_s20 }
 0x521   :  { %617 = vrot.lane.b32.xlu2 %v599_v56, %s1537_s12  ;;  %606 = vrot.lane.b32.xlu1 %v599_v56, %s1538_s13 }
 0x522   :  { %636 = vrot.lane.b32.xlu0 %v600_v55, %s1540_s18 }
 0x52a   :  { %602 = vrot.lane.b32.xlu0 %v600_v55, %s1538_s13 }
 0x55b   :  { %v661_v38 = vpop.permute.xlu2 %660 }
 0x563   :  { %v685_v62 = vpop.permute.xlu2 %684 }
 0x56b   :  { %v652_v37 = vpop.permute.xlu2 %651 }
 0x573   :  { %v672_v41 = vpop.permute.xlu1 %671  ;;  %v626_v32 = vpop.permute.xlu2 %625 }
 0x574   :  { %v683_v24 = vpop.permute.xlu0 %682 }
 0x575   :  { %v686_v31 = vsel %vm269_vm7, %v683_v24, %v685_v62  ;;  %v690_v21 = vsel %vm269_vm7, %v685_v62, %v683_v24  ;;  %v2566_v24 = vld [vmem:[#allocation6_spill] sm:$0xff] }
 0x576   :  { %v691_v33 = vmul.f32 %v2313_v23, %v686_v31  ;;  %v692_v25 = vmul.f32 %v2319_v61, %v690_v21  ;;  %v2567_v21 = vld [vmem:[#allocation4_spill] sm:$0xff] }
 0x578   :  { %704 = vmatpush.msra.mxu0 %v691_v33  ;;  %724 = vmatpush.msrb.mxu1 %v692_v25  ;;  %v2568_v25 = vld [vmem:[#allocation5_spill] sm:$0xff] }
 0x57b   :  { %v650_v15 = vpop.permute.xlu1 %649  ;;  %v618_v36 = vpop.permute.xlu2 %617 }
 0x57c   :  { %v629_v34 = vpop.permute.xlu0 %628  ;;  %v653_v12 = vsel %vm203_vm4, %v650_v15, %v652_v37  ;;  %v657_v20 = vsel %vm203_vm4, %v652_v37, %v650_v15 }
 0x57d   :  { %v658_v46 = vmul.f32 %v653_v12, %v1743_v7  ;;  %v659_v27 = vmul.f32 %v657_v20, %v1745_v8  ;;  %v630_v5 = vsel %vm148_vm1, %v629_v34, %v626_v32  ;;  %v633_v48 = vsel %vm148_vm1, %v626_v32, %v629_v34  ;;  %v1425_v32 = vld [vmem:[%s2543_s2 + $0x78] sm:$0xff]  ;;  %v1424_v12 = vld [vmem:[%s2543_s2 + $0x70] sm:$0xff]  ;;  %v1423_v20 = vld [vmem:[%s2543_s2 + $0x68] sm:$0xff] }
 0x57e   :  { %v635_v31 = vmul.f32 %v630_v5, %v2566_v24 }
 0x583   :  { %v640_v14 = vpop.permute.xlu1 %639 }
 0x584   :  { %v674_v42 = vpop.permute.xlu0 %673 }
 0x585   :  { %v675_v50 = vsel %vm247_vm6, %v672_v41, %v674_v42  ;;  %v679_v9 = vsel %vm247_vm6, %v674_v42, %v672_v41  ;;  %v634_v41 = vmul.f32 %v633_v48, %v1706_v39 }
 0x586   :  { %v680_v10 = vmul.f32 %v675_v50, %v1764_v4  ;;  %v681_v53 = vmul.f32 %v679_v9, %v1768_v44  ;;  %v2569_v9 = vld [vmem:[#allocation2_spill] sm:$0xff] }
 0x588   :  { %705 = vmatpush.msra.mxu0 %v680_v10  ;;  %725 = vmatpush.msrb.mxu1 %v681_v53  ;;  %v2570_v53 = vld [vmem:[#allocation3_spill] sm:$0xff] }
 0x58b   :  { %v615_v43 = vpop.permute.xlu1 %614 }
 0x58c   :  { %v663_v28 = vpop.permute.xlu0 %662  ;;  %v619_v55 = vsel %vm126_vm2, %v618_v36, %v615_v43  ;;  %v622_v56 = vsel %vm126_vm2, %v615_v43, %v618_v36 }
 0x58d   :  { %v664_v47 = vsel %vm225_vm5, %v661_v38, %v663_v28  ;;  %v668_v49 = vsel %vm225_vm5, %v663_v28, %v661_v38  ;;  %v623_v33 = vmul.f32 %v622_v56, %v2567_v21  ;;  %v624_v34 = vmul.f32 %v619_v55, %v2568_v25  ;;  %v2358_v28 = vld [vmem:[%s2547_s8] sm:$0xff] }
 0x58e   :  { %v669_v26 = vmul.f32 %v664_v47, %v1752_v16  ;;  %v670_v57 = vmul.f32 %v668_v49, %v1754_v17  ;;  %v1422_v47 = vld [vmem:[%s2543_s2 + $0x60] sm:$0xff]  ;;  %v1421_v49 = vld [vmem:[%s2543_s2 + $0x58] sm:$0xff] }
 0x590   :  { %706 = vmatpush.msra.mxu0 %v669_v26  ;;  %726 = vmatpush.msrb.mxu1 %v670_v57  ;;  %v1420_v26 = vld [vmem:[%s2543_s2 + $0x50] sm:$0xff]  ;;  %v999_v57 = vpop.f32.mrf.mxu2 }
 0x592   :  { %707 = vmatpush.msra.mxu0 %v658_v46  ;;  %727 = vmatpush.msrb.mxu1 %v659_v27 }
 0x593   :  { %v607_v15 = vpop.permute.xlu1 %606 }
 0x594   :  { %728 = vmatpush.msrb.mxu1 %v648_v11  ;;  %v637_v59 = vpop.permute.xlu0 %636  ;;  %708 = vmatpush.msra.mxu0 %v647_v40 }
 0x595   :  { %v641_v63 = vsel %vm170_vm3, %v640_v14, %v637_v59  ;;  %v644_v35 = vsel %vm170_vm3, %v637_v59, %v640_v14 }
 0x596   :  { %v645_v38 = vmul.f32 %v644_v35, %v1722_v51  ;;  %v646_v62 = vmul.f32 %v641_v63, %v1724_v52 }
 0x598   :  { %709 = vmatpush.msra.mxu0 %v645_v38  ;;  %729 = vmatpush.msrb.mxu1 %v646_v62 }
 0x59a   :  { %710 = vmatpush.msra.mxu0 %v634_v41  ;;  %730 = vmatpush.msrb.mxu1 %v635_v31 }
 0x59c   :  { %731 = vmatpush.msrb.mxu1 %v624_v34  ;;  %v603_v37 = vpop.permute.xlu0 %602  ;;  %711 = vmatpush.msra.mxu0 %v623_v33 }
 0x59d   :  { %v608_v42 = vsel %vm105_vm0, %v607_v15, %v603_v37  ;;  %v611_v50 = vsel %vm105_vm0, %v603_v37, %v607_v15 }
 0x59e   :  { %v612_v10 = vmul.f32 %v611_v50, %v2569_v9  ;;  %v613_v14 = vmul.f32 %v608_v42, %v2570_v53 }
 0x5a0   :  { %712 = vmatpush.msra.mxu0 %v612_v10  ;;  %732 = vmatpush.msrb.mxu1 %v613_v14 }
 0x5a1   :  { %1414 = vmatmul.msk.f32.vlgmr.msrb.gmra.mxu1 %vm693_vm11, %v2358_v28  ;;  %1413 = vmatmul.msk.f32.vlgmr.msra.gmra.mxu0 %vm693_vm11, %v2358_v28 }
 0x5a2   :  { %1033 = vmatpush.msrb.mxu0 %v1425_v32  ;;  %1067 = vmatpush.msra.mxu1 %v2181_v3  ;;  %v1419_v3 = vld [vmem:[%s2543_s2 + $0x48] sm:$0xff] }
 0x5a4   :  { %1034 = vmatpush.msrb.mxu0 %v1424_v12  ;;  %1068 = vmatpush.msra.mxu1 %v2186_v18  ;;  %v1019_v18 = vpop.f32.mrf.mxu3 }
 0x5a5   :  { %v1020_v46 = vadd.f32 %v1019_v18, %v999_v57 }
 0x5a6   :  { %1035 = vmatpush.msrb.mxu0 %v1423_v20  ;;  %1069 = vmatpush.msra.mxu1 %v2192_v45  ;;  %v1418_v45 = vld [vmem:[%s2543_s2 + $0x40] sm:$0xff] }
 0x5a8   :  { %1036 = vmatpush.msrb.mxu0 %v1422_v47  ;;  %1070 = vmatpush.msra.mxu1 %v2199_v29 }
 0x5aa   :  { %1037 = vmatpush.msrb.mxu0 %v1421_v49  ;;  %1071 = vmatpush.msra.mxu1 %v2205_v19 }
 0x5ac   :  { %1038 = vmatpush.msrb.mxu0 %v1420_v26  ;;  %1072 = vmatpush.msra.mxu1 %v2211_v60 }
 0x5ae   :  { %1039 = vmatpush.msrb.mxu0 %v1419_v3  ;;  %1073 = vmatpush.msra.mxu1 %v2218_v22 }
 0x5b0   :  { %1040 = vmatpush.msrb.mxu0 %v1418_v45  ;;  %1074 = vmatpush.msra.mxu1 %v2225_v0  ;;  %v1096_v0 = vpop.f32.mrf.mxu2 }
 0x5b1   :  { %1426 = vmatmul.msk.f32.vlgmr.msrb.gmra.mxu0 %vm387_vm12, %v1020_v46  ;;  %1427 = vmatmul.msk.f32.vlgmr.msra.gmra.mxu1 %vm387_vm12, %v2234_v54  ;;  %vm2574_vm12 = vmmov %vm2573_vm8 }
 0x5b2   :  { %1431 = vmatpush.msk.msra.mxu0 %vm2573_vm8, %v1096_v0 }
 0x61e   :  { %v2396_v29 = vpop.f32.mrf.mxu0  ;;  %v2400_v59 = vpop.f32.mrf.mxu1 }
 0x62e   :  { %v1042_v19 = vpop.f32.mrf.mxu0  ;;  %v1076_v5 = vpop.f32.mrf.mxu1 }
 0x62f   :  { %v1045_v27 = vsel %vm2571_vm14, %v1042_v19, -inf  ;;  %1429 = vmatpush.msk.msrb.mxu3 %vm2574_vm12, %v1076_v5 }
 0x630   :  { %1046 = vmax.xlane.f32.xlu2 %v1045_v27 }
 0x6a3   :  { %v1047_v60 = vpop.xlane.xlu2 %1046 }
 0x6a4   :  { %v1048_v43 = vsub.f32 %v1042_v19, %v1047_v60 }
 0x6a6   :  { %v1049_v11 = vmul.f32 1.442695, %v1048_v43 }
 0x6a8   :  { %1505 = vpow2.f32 %v1049_v11 }
 0x6ae   :  { %v1506_v40 = vpop.eup %1505 }
 0x6af   :  { %v1051_v22 = vsel %vm2572_vm15, %v1506_v40, 0.0 }
 0x6b0   :  { %1052 = vadd.xlane.f32.xlu0 %v1051_v22 }
 0x723   :  { %v1053_v54 = vpop.xlane.xlu0 %1052 }
 0x724   :  { %1507 = vrcp.f32 %v1053_v54 }
 0x72a   :  { %v1508_v48 = vpop.eup %1507 }
 0x72b   :  { %v1055_v63 = vmul.f32 %v1508_v48, %v1506_v40 }
 0x72d   :  { %1430 = vmatmul.msk.f32.vlgmr.msrb.gmra.mxu3 %vm2575_vm10, %v1055_v63  ;;  %1432 = vmatmul.msk.f32.vlgmr.msra.gmra.mxu0 %vm2576_vm13, %v1055_v63 }
 0x7aa   :  { %v1145_v35 = vpop.f32.mrf.mxu0 }
 0x7ab   :  { %v2408_v36 = vadd.f32 %v1145_v35, %v468_v6 }
 0x7ad   :  { %v2411_v38 = vmul.f32 0.70710677, %v2408_v36 }
 0x7af   :  { %v1157_v62 = vand.u32 2147483647, %v2411_v38 }
 0x7b0   :  { %v1125_v55 = vpop.f32.mrf.mxu3 }
 0x7b1   :  { %v1159_v56 = vmul.f32 0.3275911, %v1157_v62  ;;  %v2416_v41 = vadd.f32 %v1125_v55, %v467_v13  ;;  %v1211_v26 = vsub.f32 0.0, %v1157_v62 }
 0x7b3   :  { %v1161_v31 = vadd.f32 1.0, %v1159_v56  ;;  %v2419_v33 = vmul.f32 0.70710677, %v2416_v41  ;;  %v1213_v27 = vmul.f32 %v1211_v26, %v1157_v62 }
 0x7b5   :  { %1509 = vrcp.f32 %v1161_v31  ;;  %v1156_v34 = vand.u32 2147483647, %v2419_v33  ;;  %v1188_v10 = vand.u32 2147483648, %v1161_v31  ;;  %v1186_v32 = vand.u32 2147483647, %v1161_v31 }
 0x7b6   :  { %vm1182_vm14 = vweird.f32 %v1161_v31  ;;  %v1216_v54 = vmul.f32 1.442695, %v1213_v27 }
 0x7b7   :  { %v1158_v6 = vmul.f32 0.3275911, %v1156_v34  ;;  %v1189_v12 = vor.u32 1.1754944e-38, %v1188_v10  ;;  %vm1187_vm8 = vcmp.eq.f32.partialorder %v1186_v32, 8.507059e+37  ;;  %v1210_v5 = vsub.f32 0.0, %v1156_v34 }
 0x7b9   :  { %v1160_v15 = vadd.f32 1.0, %v1158_v6  ;;  %v1212_v56 = vmul.f32 %v1210_v5, %v1156_v34 }
 0x7bb   :  { %v1510_v37 = vpop.eup %1509  ;;  %1511 = vrcp.f32 %v1160_v15  ;;  %v1173_v45 = vand.u32 2147483648, %v1160_v15  ;;  %v1171_v46 = vand.u32 2147483647, %v1160_v15  ;;  %vm1167_vm10 = vweird.f32 %v1160_v15 }
 0x7bc   :  { %v1178_v42 = vmul.f32 %v1510_v37, %v1161_v31  ;;  %vm1183_vm9 = vweird.f32 %v1510_v37  ;;  %1513 = vpow2.f32 %v1216_v54 }
 0x7bd   :  { %vm1184_vm15 = vmor %vm1182_vm14, %vm1183_vm9  ;;  %v1174_v11 = vor.u32 1.1754944e-38, %v1173_v45  ;;  %vm1172_vm9 = vcmp.eq.f32.partialorder %v1171_v46, 8.507059e+37  ;;  %vm1153_vm14 = vcmp.ge.f32.partialorder %v2411_v38, 0.0 }
 0x7be   :  { %v1179_v50 = vsub.f32 1.0, %v1178_v42 }
 0x7c0   :  { %v1180_v14 = vmul.f32 %v1510_v37, %v1179_v50 }
 0x7c1   :  { %v1512_v30 = vpop.eup %1511 }
 0x7c2   :  { %v1181_v13 = vadd.f32 %v1510_v37, %v1180_v14  ;;  %v1163_v20 = vmul.f32 %v1512_v30, %v1160_v15  ;;  %vm1168_vm12 = vweird.f32 %v1512_v30  ;;  %v1214_v15 = vmul.f32 1.442695, %v1212_v56  ;;  %v1514_v10 = vpop.eup %1513 }
 0x7c3   :  { %vm1169_vm13 = vmor %vm1167_vm10, %vm1168_vm12 }
 0x7c4   :  { %v1185_v47 = vsel %vm1184_vm15, %v1510_v37, %v1181_v13  ;;  %v1164_v3 = vsub.f32 1.0, %v1163_v20  ;;  %1515 = vpow2.f32 %v1214_v15  ;;  %vm1152_vm15 = vcmp.ge.f32.partialorder %v2419_v33, 0.0 }
 0x7c5   :  { %v1190_v49 = vsel %vm1187_vm8, %v1189_v12, %v1185_v47  ;;  %v1155_v12 = vsel %vm1153_vm14, 1.0, %v1554_v58  ;;  %v1154_v38 = vsel %vm1152_vm15, 1.0, %v1554_v58  ;;  %v737_v58 = vmul.f32 %v2396_v29, %v2396_v29 }
 0x7c6   :  { %v1193_v18 = vmul.f32 1.0614054, %v1190_v49  ;;  %v1165_v57 = vmul.f32 %v1512_v30, %v1164_v3  ;;  %v1149_v3 = vmul.f32 0.5, %v2408_v36 }
 0x7c8   :  { %v1195_v19 = vadd.f32 -1.4531521, %v1193_v18  ;;  %v1166_v60 = vadd.f32 %v1512_v30, %v1165_v57 }
 0x7ca   :  { %v1197_v43 = vmul.f32 %v1195_v19, %v1190_v49  ;;  %v1170_v40 = vsel %vm1169_vm13, %v1512_v30, %v1166_v60  ;;  %v1516_v26 = vpop.eup %1515  ;;  %v1148_v19 = vmul.f32 0.5, %v2416_v41  ;;  %v738_v41 = vmul.f32 %v2400_v59, %v2400_v59 }
 0x7cb   :  { %v1175_v0 = vsel %vm1172_vm9, %v1174_v11, %v1170_v40  ;;  %v1555_v60 = vmov 11   ;;  %v1529_v11 = vld [vmem:[%s2541_s4] sm:$0xff]  ;;  %v1557_v40 = vmov 12  }
 0x7cc   :  { %v1199_v22 = vadd.f32 1.4214138, %v1197_v43  ;;  %v1192_v48 = vmul.f32 1.0614054, %v1175_v0  ;;  %v739_v27 = vadd.f32 %v738_v41, %v737_v58  ;;  %1481 = vset.pattern.permute.xlu1 %v1555_v60  ;;  %v1556_v43 = vmov 13  }
 0x7cd   :  { %1484 = vset.pattern.permute.xlu0 %v1556_v43 }
 0x7ce   :  { %v1201_v63 = vmul.f32 %v1199_v22, %v1190_v49  ;;  %v1194_v35 = vadd.f32 -1.4531521, %v1192_v48 }
 0x7d0   :  { %v1203_v55 = vadd.f32 -0.28449672, %v1201_v63  ;;  %v1196_v31 = vmul.f32 %v1194_v35, %v1175_v0 }
 0x7d2   :  { %v1205_v6 = vmul.f32 %v1203_v55, %v1190_v49  ;;  %v1198_v62 = vadd.f32 1.4214138, %v1196_v31 }
 0x7d4   :  { %v1207_v37 = vadd.f32 0.2548296, %v1205_v6  ;;  %v1200_v42 = vmul.f32 %v1198_v62, %v1175_v0 }
 0x7d6   :  { %v1209_v50 = vmul.f32 %v1207_v37, %v1190_v49  ;;  %v1202_v14 = vadd.f32 -0.28449672, %v1200_v42 }
 0x7d8   :  { %v1219_v32 = vmul.f32 %v1514_v10, %v1209_v50  ;;  %v1204_v30 = vmul.f32 %v1202_v14, %v1175_v0 }
 0x7da   :  { %v1221_v13 = vsub.f32 1.0, %v1219_v32  ;;  %v1206_v20 = vadd.f32 0.2548296, %v1204_v30 }
 0x7dc   :  { %v1223_v34 = vmul.f32 %v1221_v13, %v1155_v12  ;;  %v1208_v47 = vmul.f32 %v1206_v20, %v1175_v0 }
 0x7de   :  { %v1225_v18 = vadd.f32 1.0, %v1223_v34  ;;  %v1218_v49 = vmul.f32 %v1516_v26, %v1208_v47 }
 0x7e0   :  { %v2426_v45 = vmul.f32 %v1225_v18, %v1149_v3  ;;  %v1220_v57 = vsub.f32 1.0, %v1218_v49 }
 0x7e2   :  { %1252 = vrot.lane.b32.xlu0 %v2426_v45, %s1536_s11  ;;  %1289 = vrot.lane.b32.xlu2 %v2426_v45, %s1545_s20  ;;  %v1222_v46 = vmul.f32 %v1220_v57, %v1154_v38  ;;  %v1275_v3 = vmul.f32 %v2426_v45, %v1738_v2 }
 0x7e3   :  { %1311 = vrot.lane.b32.xlu1 %v2426_v45, %s1548_s22 }
 0x7e4   :  { %v1224_v36 = vadd.f32 1.0, %v1222_v46 }
 0x7e6   :  { %v2436_v33 = vmul.f32 %v1224_v36, %v1148_v19 }
 0x7e8   :  { %v1274_v18 = vmul.f32 %v2436_v33, %v1736_v1 }
 0x7ea   :  { %1255 = vrot.lane.b32.xlu2 %v2436_v33, %s1536_s11  ;;  %1276 = vrot.lane.b32.xlu0 %v2436_v33, %s1543_s19 }
 0x7eb   :  { %1300 = vrot.lane.b32.xlu1 %v2426_v45, %s1546_s21 }
 0x7f2   :  { %1229 = vrot.lane.b32.xlu2 %v2426_v45, %s1538_s13  ;;  %1244 = vrot.lane.b32.xlu0 %v2436_v33, %s1537_s12 }
 0x7f3   :  { %1278 = vrot.lane.b32.xlu1 %v2426_v45, %s1543_s19 }
 0x7fb   :  { %1263 = vrot.lane.b32.xlu1 %v2426_v45, %s1540_s18 }
 0x803   :  { %1241 = vrot.lane.b32.xlu1 %v2426_v45, %s1537_s12 }
 0x80b   :  { %1309 = vrot.lane.b32.xlu1 %v2436_v33, %s1548_s22 }
 0x813   :  { %1298 = vrot.lane.b32.xlu1 %v2436_v33, %s1546_s21 }
 0x81b   :  { %1287 = vrot.lane.b32.xlu1 %v2436_v33, %s1545_s20 }
 0x81c   :  { %740 = vadd.xlane.f32.xlu0 %v739_v27 }
 0x823   :  { %1266 = vrot.lane.b32.xlu1 %v2436_v33, %s1540_s18 }
 0x82b   :  { %1233 = vrot.lane.b32.xlu1 %v2436_v33, %s1538_s13 }
 0x833   :  { %774 = vperm.xlu1 %1481, %v1529_v11  }
 0x83b   :  { %1482 = vset.pattern.permute.xlu1 %v1557_v40 }
 0x83c   :  { %780 = vperm.xlu1 %1482, %v1529_v11   ;;  %v1290_v32 = vpop.permute.xlu2 %1289 }
 0x844   :  { %1483 = vset.pattern.permute.xlu1 %v1556_v43  ;;  %v1256_v26 = vpop.permute.xlu2 %1255 }
 0x845   :  { %788 = vperm.xlu1 %1483, %v1529_v11  }
 0x854   :  { %v1253_v48 = vpop.permute.xlu0 %1252 }
 0x855   :  { %v1312_v22 = vpop.permute.xlu1 %1311 }
 0x85c   :  { %v1277_v35 = vpop.permute.xlu0 %1276 }
 0x85d   :  { %v1301_v0 = vpop.permute.xlu1 %1300 }
 0x864   :  { %v1245_v50 = vpop.permute.xlu0 %1244 }
 0x865   :  { %v1279_v5 = vpop.permute.xlu1 %1278 }
 0x86d   :  { %v1264_v54 = vpop.permute.xlu1 %1263 }
 0x875   :  { %v1242_v63 = vpop.permute.xlu1 %1241 }
 0x876   :  { %v1246_v1 = vsel %vm126_vm2, %v1245_v50, %v1242_v63  ;;  %v1249_v36 = vsel %vm126_vm2, %v1242_v63, %v1245_v50 }
 0x877   :  { %v1250_v27 = vmul.f32 %v1249_v36, %v2567_v21  ;;  %v1251_v60 = vmul.f32 %v1246_v1, %v2568_v25 }
 0x87d   :  { %v1310_v55 = vpop.permute.xlu1 %1309 }
 0x87e   :  { %v1313_v56 = vsel %vm269_vm7, %v1310_v55, %v1312_v22  ;;  %v1317_v31 = vsel %vm269_vm7, %v1312_v22, %v1310_v55 }
 0x87f   :  { %v1318_v6 = vmul.f32 %v2313_v23, %v1313_v56  ;;  %v1319_v62 = vmul.f32 %v2319_v61, %v1317_v31  ;;  %v1280_v23 = vsel %vm203_vm4, %v1277_v35, %v1279_v5  ;;  %v1284_v61 = vsel %vm203_vm4, %v1279_v5, %v1277_v35 }
 0x881   :  { %1327 = vmatpush.msrb.mxu1 %v1318_v6  ;;  %1347 = vmatpush.msra.mxu3 %v1319_v62 }
 0x885   :  { %v1299_v37 = vpop.permute.xlu1 %1298 }
 0x886   :  { %v1302_v15 = vsel %vm247_vm6, %v1299_v37, %v1301_v0  ;;  %v1306_v42 = vsel %vm247_vm6, %v1301_v0, %v1299_v37 }
 0x887   :  { %v1307_v10 = vmul.f32 %v1302_v15, %v1764_v4  ;;  %v1308_v14 = vmul.f32 %v1306_v42, %v1768_v44  ;;  %v1285_v4 = vmul.f32 %v1280_v23, %v1743_v7  ;;  %v1286_v44 = vmul.f32 %v1284_v61, %v1745_v8 }
 0x888   :  { %v1257_v7 = vsel %vm148_vm1, %v1256_v26, %v1253_v48  ;;  %v1260_v8 = vsel %vm148_vm1, %v1253_v48, %v1256_v26  ;;  %v1530_v26 = vld [vmem:[%s2539_s0] sm:$0xff] }
 0x889   :  { %1328 = vmatpush.msrb.mxu1 %v1307_v10  ;;  %1348 = vmatpush.msra.mxu3 %v1308_v14  ;;  %v1261_v19 = vmul.f32 %v1260_v8, %v1706_v39  ;;  %v1262_v33 = vmul.f32 %v1257_v7, %v2566_v24 }
 0x88d   :  { %v1288_v30 = vpop.permute.xlu1 %1287 }
 0x88e   :  { %v1291_v13 = vsel %vm225_vm5, %v1288_v30, %v1290_v32  ;;  %v1295_v12 = vsel %vm225_vm5, %v1290_v32, %v1288_v30 }
 0x88f   :  { %v1296_v20 = vmul.f32 %v1291_v13, %v1752_v16  ;;  %v1297_v34 = vmul.f32 %v1295_v12, %v1754_v17  ;;  %v741_v47 = vpop.xlane.xlu0 %740  ;;  %v1558_v17 = vmov 8.0  }
 0x890   :  { %1517 = vrsqrt.f32 %v741_v47  ;;  %vm749_vm1 = vcmp.eq.f32.partialorder %v741_v47, inf  ;;  %v752_v25 = vand.u32 2147483648, %v741_v47 }
 0x891   :  { %1329 = vmatpush.msrb.mxu1 %v1296_v20  ;;  %1349 = vmatpush.msra.mxu3 %v1297_v34  ;;  %1519 = vrcp.f32 %v1558_v17 }
 0x893   :  { %1330 = vmatpush.msrb.mxu1 %v1285_v4  ;;  %1350 = vmatpush.msra.mxu3 %v1286_v44 }
 0x895   :  { %1351 = vmatpush.msra.mxu3 %v1275_v3  ;;  %v1267_v16 = vpop.permute.xlu1 %1266  ;;  %1331 = vmatpush.msrb.mxu1 %v1274_v18  ;;  %v1531_v18 = vld [vmem:[%s2539_s0 + $0x8] sm:$0xff] }
 0x896   :  { %v1518_v49 = vpop.eup %1517  ;;  %v1268_v57 = vsel %vm170_vm3, %v1267_v16, %v1264_v54  ;;  %v1271_v38 = vsel %vm170_vm3, %v1264_v54, %v1267_v16 }
 0x897   :  { %v743_v46 = vmul.f32 %v1518_v49, %v741_v47  ;;  %v1272_v2 = vmul.f32 %v1271_v38, %v1722_v51  ;;  %v1273_v45 = vmul.f32 %v1268_v57, %v1724_v52  ;;  %v1520_v41 = vpop.eup %1519  ;;  %v1230_v51 = vpop.permute.xlu2 %1229 }
 0x898   :  { %v761_v40 = vmul.f32 8.0, %v1520_v41  ;;  %vm765_vm2 = vweird.f32 %v1520_v41 }
 0x899   :  { %v744_v58 = vmul.f32 %v1518_v49, %v743_v46  ;;  %1332 = vmatpush.msrb.mxu1 %v1272_v2  ;;  %1352 = vmatpush.msra.mxu3 %v1273_v45 }
 0x89a   :  { %v762_v54 = vsub.f32 1.0, %v761_v40 }
 0x89b   :  { %v745_v43 = vmul.f32 0.5, %v744_v58  ;;  %1333 = vmatpush.msrb.mxu1 %v1261_v19  ;;  %1353 = vmatpush.msra.mxu3 %v1262_v33 }
 0x89c   :  { %v763_v55 = vmul.f32 %v1520_v41, %v762_v54 }
 0x89d   :  { %v746_v52 = vsub.f32 1.5, %v745_v43  ;;  %1354 = vmatpush.msra.mxu3 %v1251_v60  ;;  %v1234_v11 = vpop.permute.xlu1 %1233  ;;  %1334 = vmatpush.msrb.mxu1 %v1250_v27 }
 0x89e   :  { %v1235_v39 = vsel %vm105_vm0, %v1234_v11, %v1230_v51  ;;  %v1238_v24 = vsel %vm105_vm0, %v1230_v51, %v1234_v11  ;;  %vm751_vm0 = vcmp.eq.f32.partialorder %v741_v47, 0.0 }
 0x89f   :  { %v747_v22 = vmul.f32 %v1518_v49, %v746_v52  ;;  %v1239_v0 = vmul.f32 %v1238_v24, %v2569_v9  ;;  %v1240_v21 = vmul.f32 %v1235_v39, %v2570_v53  ;;  %v764_v53 = vadd.f32 %v1520_v41, %v763_v55 }
 0x8a1   :  { %v748_v5 = vmul.f32 %v747_v22, %v741_v47  ;;  %1335 = vmatpush.msrb.mxu1 %v1239_v0  ;;  %1355 = vmatpush.msra.mxu3 %v1240_v21  ;;  %v766_v62 = vsel %vm765_vm2, %v1520_v41, %v764_v53  ;;  %v1533_v53 = vld [vmem:[%s2539_s0 + $0x18] sm:$0xff] }
 0x8a2   :  { %1434 = vmatmul.msk.f32.vlgmr.msra.gmra.mxu3 %vm693_vm11, %v2358_v28  ;;  %1433 = vmatmul.msk.f32.vlgmr.msrb.gmra.mxu1 %vm693_vm11, %v2358_v28 }
 0x8a3   :  { %v750_v48 = vsel %vm749_vm1, %v741_v47, %v748_v5 }
 0x8a4   :  { %v753_v63 = vsel %vm751_vm0, %v752_v25, %v750_v48 }
 0x8a5   :  { %v754_v35 = vrot.slane %v753_v63, 4  ;;  %v775_v37 = vpop.permute.xlu1 %774 }
 0x8a7   :  { %v755_v9 = vadd.f32 %v754_v35, %v753_v63 }
 0x8a9   :  { %v756_v56 = vrot.slane %v755_v9, 2 }
 0x8ab   :  { %v757_v31 = vadd.f32 %v756_v56, %v755_v9  ;;  %v1532_v9 = vld [vmem:[%s2539_s0 + $0x10] sm:$0xff] }
 0x8ad   :  { %v758_v6 = vrot.slane %v757_v31, 1 }
 0x8ae   :  { %v781_v10 = vpop.permute.xlu1 %780 }
 0x8af   :  { %v759_v15 = vadd.f32 %v758_v6, %v757_v31 }
 0x8b1   :  { %v767_v42 = vmul.f32 %v766_v62, %v759_v15 }
 0x8b3   :  { %v768_v50 = vadd.f32 1e-06, %v767_v42 }
 0x8b5   :  { %1521 = vrcp.f32 %v768_v50 }
 0x8b7   :  { %v789_v20 = vpop.permute.xlu1 %788 }
 0x8bb   :  { %v1522_v28 = vpop.eup %1521 }
 0x8bc   :  { %v770_v14 = vmul.f32 %v1522_v28, %v753_v63 }
 0x8be   :  { %v771_v32 = vmul.f32 %v770_v14, %v2396_v29  ;;  %v772_v30 = vmul.f32 %v770_v14, %v2400_v59 }
 0x8c0   :  { %v777_v23 = vmul.f32 %v775_v37, %v771_v32  ;;  %v778_v61 = vmul.f32 %v775_v37, %v772_v30 }
 0x8c2   :  { %v783_v13 = vadd.f32 %v781_v10, %v777_v23  ;;  %v784_v12 = vadd.f32 %v781_v10, %v778_v61 }
 0x8c4   :  { %v785_v34 = vadd.f32 %v783_v13, %v2396_v29  ;;  %v786_v47 = vadd.f32 %v784_v12, %v2400_v59 }
 0x8c6   :  { %v791_v4 = vmul.f32 %v789_v20, %v785_v34  ;;  %v792_v44 = vmul.f32 %v789_v20, %v786_v47 }
 0x8c8   :  { %v793_v3 = vadd.f32 %v1530_v26, %v791_v4  ;;  %v794_v16 = vadd.f32 %v1531_v18, %v792_v44 }
 0x8ca   :  { %795 = vst [vmem:[%s2548_s9] sm:$0xff] %v793_v3 }
 0x8cb   :  { %796 = vst [vmem:[%s2548_s9 + $0x8] sm:$0xff] %v794_v16 }
 0x91f   :  { %v1337_v29 = vpop.f32.mrf.mxu1 }
 0x920   :  { %v1360_v59 = vmul.f32 %v1337_v29, %v1337_v29 }
 0x925   :  { %v1357_v17 = vpop.f32.mrf.mxu3 }
 0x926   :  { %v1361_v49 = vmul.f32 %v1357_v17, %v1357_v17 }
 0x928   :  { %v1362_v7 = vadd.f32 %v1361_v49, %v1360_v59 }
 0x92a   :  { %1363 = vadd.xlane.f32.xlu2 %v1362_v7 }
 0x99d   :  { %v1364_v8 = vpop.xlane.xlu2 %1363 }
 0x99e   :  { %1523 = vrsqrt.f32 %v1364_v8  ;;  %vm1372_vm3 = vcmp.eq.f32.partialorder %v1364_v8, inf  ;;  %v1375_v19 = vand.u32 2147483648, %v1364_v8  ;;  %vm1374_vm4 = vcmp.eq.f32.partialorder %v1364_v8, 0.0 }
 0x9a4   :  { %v1524_v57 = vpop.eup %1523 }
 0x9a5   :  { %v1366_v38 = vmul.f32 %v1524_v57, %v1364_v8 }
 0x9a7   :  { %v1367_v46 = vmul.f32 %v1524_v57, %v1366_v38 }
 0x9a9   :  { %v1368_v2 = vmul.f32 0.5, %v1367_v46 }
 0x9ab   :  { %v1369_v45 = vsub.f32 1.5, %v1368_v2 }
 0x9ad   :  { %v1370_v1 = vmul.f32 %v1524_v57, %v1369_v45 }
 0x9af   :  { %v1371_v36 = vmul.f32 %v1370_v1, %v1364_v8 }
 0x9b1   :  { %v1373_v33 = vsel %vm1372_vm3, %v1364_v8, %v1371_v36 }
 0x9b2   :  { %v1376_v58 = vsel %vm1374_vm4, %v1375_v19, %v1373_v33 }
 0x9b3   :  { %v1377_v41 = vrot.slane %v1376_v58, 4 }
 0x9b5   :  { %v1378_v27 = vadd.f32 %v1377_v41, %v1376_v58 }
 0x9b7   :  { %v1379_v60 = vrot.slane %v1378_v27, 2 }
 0x9b9   :  { %v1380_v43 = vadd.f32 %v1379_v60, %v1378_v27 }
 0x9bb   :  { %v1381_v51 = vrot.slane %v1380_v43, 1 }
 0x9bd   :  { %v1382_v52 = vadd.f32 %v1381_v51, %v1380_v43 }
 0x9bf   :  { %v1383_v11 = vmul.f32 %v1382_v52, %v766_v62 }
 0x9c1   :  { %v1384_v39 = vadd.f32 1e-06, %v1383_v11 }
 0x9c3   :  { %1525 = vrcp.f32 %v1384_v39 }
 0x9c9   :  { %v1526_v24 = vpop.eup %1525 }
 0x9ca   :  { %v1386_v40 = vmul.f32 %v1526_v24, %v1376_v58 }
 0x9cc   :  { %v1387_v22 = vmul.f32 %v1386_v40, %v1337_v29  ;;  %v1388_v0 = vmul.f32 %v1386_v40, %v1357_v17 }
 0x9ce   :  { %v1389_v21 = vmul.f32 %v1387_v22, %v775_v37  ;;  %v1390_v5 = vmul.f32 %v1388_v0, %v775_v37 }
 0x9d0   :  { %v1391_v25 = vadd.f32 %v1389_v21, %v781_v10  ;;  %v1392_v54 = vadd.f32 %v1390_v5, %v781_v10 }
 0x9d2   :  { %v1393_v48 = vadd.f32 %v1391_v25, %v1337_v29  ;;  %v1394_v63 = vadd.f32 %v1392_v54, %v1357_v17 }
 0x9d4   :  { %v1395_v35 = vmul.f32 %v1393_v48, %v789_v20  ;;  %v1396_v55 = vmul.f32 %v1394_v63, %v789_v20 }
 0x9d6   :  { %v1397_v56 = vadd.f32 %v1532_v9, %v1395_v35  ;;  %v1398_v31 = vadd.f32 %v1533_v53, %v1396_v55 }
 0x9d8   :  { %1435 = vst [vmem:[%s2548_s9 + $0x10] sm:$0xff] %v1397_v56 }
 0x9d9   :  { %1436 = vst [vmem:[%s2548_s9 + $0x18] sm:$0xff] %v1398_v31 }

</bundles_post_ra>
